<compile_context>
chip_gen: v6e
topology: v6e:2x2x1
jax: 0.10.0
libtpu: 0.0.40
codegen_flags: <defaults>
</compile_context>

<pallas_src>
import functools

import jax
import jax.numpy as jnp
from jax.experimental import pallas as pl
from jax.experimental.pallas import tpu as pltpu


_SUB = 8                      # sublanes per batch tile
_LANE = 128                   # lanes per batch tile
_B_FOLD = _SUB * _LANE        # batch elements per grid step (full f32 vreg)
_L2_EPS = 1e-12               # F.normalize eps


def _softmin3(a, b, c, beta, inv_beta):
    """Numerically stable soft-min of three (8, 128) f32 tiles."""
    m = jnp.minimum(jnp.minimum(a, b), c)
    if beta <= 0.0:            # hard-DTW limit (beta -> 0); avoids divide-by-zero
        return m
    s = (jnp.exp((m - a) * inv_beta)
         + jnp.exp((m - b) * inv_beta)
         + jnp.exp((m - c) * inv_beta))
    return m - beta * jnp.log(s)


def _dtw_dp_kernel(cost_ref, out_ref, *, n_frames, n_cand, beta):
    """Pure soft-DTW DP over one (8, 128) batch tile.

    cost_ref: (n_frames, n_cand, 1, 8, 128) f32
    out_ref : (1, 8, 128) f32
    """
    inv_beta = 0.0 if beta <= 0.0 else 1.0 / beta

    # Rolling two-row DP storage: only `prev` row + partially built `cur` row live.
    prev = None
    for i in range(n_frames):
        cur = []
        for j in range(n_cand):
            c_ij = cost_ref[i, j, 0].astype(jnp.float32)          # (8, 128) vreg
            if i == 0 and j == 0:
                r = c_ij
            elif i == 0:
                r = c_ij + cur[j - 1]
            elif j == 0:
                r = c_ij + prev[0]
            else:
                r = c_ij + _softmin3(prev[j - 1], prev[j], cur[j - 1],
                                     beta, inv_beta)
            cur.append(r)
        prev = cur

    final = prev[n_cand - 1] * (1.0 / float(n_frames + n_cand))
    out_ref[0] = final                                            # dense (8,128) store


class AbstractLossDTW:
    """JAX/Pallas port of codes/loss/loss_dtw.py::Abstract_Loss (alignment_type='dtw')."""

    def __init__(self, dtw_beta, dtw_ratio, dtw_scale_factor,
                 temperature=0.1, alpha_weight=0.5):
        self.dtw_beta = float(dtw_beta)
        self.dtw_ratio = float(dtw_ratio)
        self.dtw_scale_factor = float(dtw_scale_factor)
        # temperature / alpha_weight are stored by the reference module but unused.

    def __call__(self, video_embd, text_embds, video_embd_frame=None,
                 pos_step=None, logit_scale=None):
        embs_v = video_embd_frame                 # (bs, n_frames, d)
        embs_t = text_embds[1]                    # (bs, n_cand,  d)
        bs, n_frames, d = embs_v.shape
        _, n_cand, _ = embs_t.shape

        # --- cost matrix in XLA (fuses normalize + contraction + layout) ---------
        def l2n(x):
            x = x.astype(jnp.float32)
            n = jnp.sqrt(jnp.sum(x * x, axis=-1, keepdims=True))
            return x / jnp.maximum(n, _L2_EPS)    # F.normalize(p=2, eps=1e-12)

        vn = l2n(embs_v)                          # (bs, n_frames, d)
        tn = l2n(embs_t)                          # (bs, n_cand,  d)
        # Emit directly in (F, C, bs) order so the kernel's batch tiling needs no
        # separate full-tensor HBM transpose pass.
        cost = self.dtw_scale_factor * (
            1.0 - jnp.einsum("bfd,bcd->fcb", vn, tn))             # (F, C, bs) f32

        num_tiles = (bs + _B_FOLD - 1) // _B_FOLD
        bs_padded = num_tiles * _B_FOLD
        pad = bs_padded - bs
        if pad:
            # Padded lanes run the DP on a zero cost matrix (finite); they are
            # sliced off before the mean below.
            cost = jnp.pad(cost, ((0, 0), (0, 0), (0, pad)))
        cost = cost.reshape(n_frames, n_cand, num_tiles, _SUB, _LANE)

        kernel = functools.partial(
            _dtw_dp_kernel, n_frames=n_frames, n_cand=n_cand, beta=self.dtw_beta)

        per_batch = pl.pallas_call(
            kernel,
            out_shape=jax.ShapeDtypeStruct((num_tiles, _SUB, _LANE), jnp.float32),
            grid_spec=pltpu.PrefetchScalarGridSpec(
                num_scalar_prefetch=0,
                grid=(num_tiles,),
                in_specs=[
                    pl.BlockSpec((n_frames, n_cand, 1, _SUB, _LANE),
                                 lambda b: (0, 0, b, 0, 0)),
                ],
                out_specs=pl.BlockSpec((1, _SUB, _LANE), lambda b: (b, 0, 0)),
            ),
            compiler_params=pltpu.CompilerParams(
                dimension_semantics=("parallel",)),
        )(cost)

        per_batch = per_batch.reshape(bs_padded)[:bs]
        # TODO(synk): the exact 'dtw_contrastive' weighting with pos_step /
        # logit_scale lives in the external dtw() helper (source not provided);
        # we return the dtw_ratio-weighted mean soft-DTW alignment cost.
        return self.dtw_ratio * jnp.mean(per_batch)


def _ref_loss(embs_v, embs_t, beta, ratio, scale):
    """Pure-JAX reference for correctness checking."""
    def l2n(x):
        n = jnp.sqrt(jnp.sum(x * x, axis=-1, keepdims=True))
        return x / jnp.maximum(n, 1e-12)
    v = l2n(embs_v.astype(jnp.float32))
    t = l2n(embs_t.astype(jnp.float32))
    cost = (1.0 - jnp.einsum("bfd,bcd->bfc", v, t)) * scale
    _, F, C = cost.shape
    R = {}
    for i in range(F):
        for j in range(C):
            c = cost[:, i, j]
            if i == 0 and j == 0:
                R[(i, j)] = c
            elif i == 0:
                R[(i, j)] = c + R[(i, j - 1)]
            elif j == 0:
                R[(i, j)] = c + R[(i - 1, j)]
            else:
                a, b, d3 = R[(i - 1, j - 1)], R[(i - 1, j)], R[(i, j - 1)]
                m = jnp.minimum(jnp.minimum(a, b), d3)
                s = (jnp.exp(-(a - m) / beta) + jnp.exp(-(b - m) / beta)
                     + jnp.exp(-(d3 - m) / beta))
                R[(i, j)] = c + m - beta * jnp.log(s)
    return ratio * jnp.mean(R[(F - 1, C - 1)] / float(F + C))


if __name__ == "__main__":
    key = jax.random.PRNGKey(0)
    bs, n_frames, n_cand, d = 2, 8, 4, 32

    k1, k2, k3, k4 = jax.random.split(key, 4)
    video_embd = jax.random.normal(k1, (bs, d), dtype=jnp.float32)        # unused by forward
    text_embd_sent = jax.random.normal(k2, (bs, d), dtype=jnp.float32)    # text_embds[0], unused
    text_embd_steps = jax.random.normal(k3, (bs, n_cand, d), dtype=jnp.float32)
    video_embd_frame = jax.random.normal(k4, (bs, n_frames, d), dtype=jnp.float32)
    pos_step = jnp.zeros((bs,), dtype=jnp.int32)

    loss_mod = AbstractLossDTW(dtw_beta=0.1, dtw_ratio=1.0, dtw_scale_factor=1.0)
    loss = loss_mod(video_embd, [text_embd_sent, text_embd_steps],
                    video_embd_frame=video_embd_frame, pos_step=pos_step)
    jax.block_until_ready(loss)

    ref = _ref_loss(video_embd_frame, text_embd_steps,
                    beta=0.1, ratio=1.0, scale=1.0)
    jax.block_until_ready(ref)

    assert loss.shape == () and jnp.isfinite(loss)
    assert jnp.allclose(loss, ref, rtol=1e-3, atol=1e-3), (loss, ref)
    print("KERNEL_OK")
</pallas_src>

<mosaic_0001>
module attributes {stable_mosaic.version = 11 : i64} {
  func.func @_dtw_dp_kernel(%arg0: i32, %arg1: memref<8x4x1x8x128xf32, #tpu.memory_space<vmem>>, %arg2: memref<1x8x128xf32, #tpu.memory_space<vmem>>) attributes {dimension_semantics = [#tpu.dimension_semantics<parallel>], iteration_bounds = array<i64: 1>, scalar_prefetch = 0 : i64, scratch_operands = 0 : i64, tpu.core_type = #tpu.core_type<tc>, window_params = [{transform_indices = @transform_0, window_bounds = array<i64: 8, 4, 1, 8, 128>}, {transform_indices = @transform_1, window_bounds = array<i64: 1, 8, 128>}]} {
    %c0 = arith.constant 0 : index
    %c0_0 = arith.constant 0 : index
    %c0_1 = arith.constant 0 : index
    %c0_2 = arith.constant 0 : index
    %c0_3 = arith.constant 0 : index
    %0 = vector.load %arg1[%c0, %c0_0, %c0_1, %c0_2, %c0_3] : memref<8x4x1x8x128xf32, #tpu.memory_space<vmem>>, vector<1x1x1x8x128xf32>
    %1 = vector.shape_cast %0 : vector<1x1x1x8x128xf32> to vector<8x128xf32>
    %c0_4 = arith.constant 0 : index
    %c1 = arith.constant 1 : index
    %c0_5 = arith.constant 0 : index
    %c0_6 = arith.constant 0 : index
    %c0_7 = arith.constant 0 : index
    %2 = vector.load %arg1[%c0_4, %c1, %c0_5, %c0_6, %c0_7] : memref<8x4x1x8x128xf32, #tpu.memory_space<vmem>>, vector<1x1x1x8x128xf32>
    %3 = vector.shape_cast %2 : vector<1x1x1x8x128xf32> to vector<8x128xf32>
    %4 = arith.addf %3, %1 : vector<8x128xf32>
    %c0_8 = arith.constant 0 : index
    %c2 = arith.constant 2 : index
    %c0_9 = arith.constant 0 : index
    %c0_10 = arith.constant 0 : index
    %c0_11 = arith.constant 0 : index
    %5 = vector.load %arg1[%c0_8, %c2, %c0_9, %c0_10, %c0_11] : memref<8x4x1x8x128xf32, #tpu.memory_space<vmem>>, vector<1x1x1x8x128xf32>
    %6 = vector.shape_cast %5 : vector<1x1x1x8x128xf32> to vector<8x128xf32>
    %7 = arith.addf %6, %4 : vector<8x128xf32>
    %c0_12 = arith.constant 0 : index
    %c3 = arith.constant 3 : index
    %c0_13 = arith.constant 0 : index
    %c0_14 = arith.constant 0 : index
    %c0_15 = arith.constant 0 : index
    %8 = vector.load %arg1[%c0_12, %c3, %c0_13, %c0_14, %c0_15] : memref<8x4x1x8x128xf32, #tpu.memory_space<vmem>>, vector<1x1x1x8x128xf32>
    %9 = vector.shape_cast %8 : vector<1x1x1x8x128xf32> to vector<8x128xf32>
    %10 = arith.addf %9, %7 : vector<8x128xf32>
    %c1_16 = arith.constant 1 : index
    %c0_17 = arith.constant 0 : index
    %c0_18 = arith.constant 0 : index
    %c0_19 = arith.constant 0 : index
    %c0_20 = arith.constant 0 : index
    %11 = vector.load %arg1[%c1_16, %c0_17, %c0_18, %c0_19, %c0_20] : memref<8x4x1x8x128xf32, #tpu.memory_space<vmem>>, vector<1x1x1x8x128xf32>
    %12 = vector.shape_cast %11 : vector<1x1x1x8x128xf32> to vector<8x128xf32>
    %13 = arith.addf %12, %1 : vector<8x128xf32>
    %c1_21 = arith.constant 1 : index
    %c1_22 = arith.constant 1 : index
    %c0_23 = arith.constant 0 : index
    %c0_24 = arith.constant 0 : index
    %c0_25 = arith.constant 0 : index
    %14 = vector.load %arg1[%c1_21, %c1_22, %c0_23, %c0_24, %c0_25] : memref<8x4x1x8x128xf32, #tpu.memory_space<vmem>>, vector<1x1x1x8x128xf32>
    %15 = vector.shape_cast %14 : vector<1x1x1x8x128xf32> to vector<8x128xf32>
    %16 = arith.minimumf %1, %4 : vector<8x128xf32>
    %17 = arith.minimumf %16, %13 : vector<8x128xf32>
    %18 = arith.subf %17, %1 : vector<8x128xf32>
    %cst = arith.constant 1.000000e+01 : f32
    %19 = vector.broadcast %cst : f32 to vector<8x128xf32>
    %20 = arith.mulf %18, %19 : vector<8x128xf32>
    %21 = math.exp %20 : vector<8x128xf32>
    %22 = arith.subf %17, %4 : vector<8x128xf32>
    %cst_26 = arith.constant 1.000000e+01 : f32
    %23 = vector.broadcast %cst_26 : f32 to vector<8x128xf32>
    %24 = arith.mulf %22, %23 : vector<8x128xf32>
    %25 = math.exp %24 : vector<8x128xf32>
    %26 = arith.addf %21, %25 : vector<8x128xf32>
    %27 = arith.subf %17, %13 : vector<8x128xf32>
    %cst_27 = arith.constant 1.000000e+01 : f32
    %28 = vector.broadcast %cst_27 : f32 to vector<8x128xf32>
    %29 = arith.mulf %27, %28 : vector<8x128xf32>
    %30 = math.exp %29 : vector<8x128xf32>
    %31 = arith.addf %26, %30 : vector<8x128xf32>
    %32 = math.log %31 : vector<8x128xf32>
    %cst_28 = arith.constant 1.000000e-01 : f32
    %33 = vector.broadcast %cst_28 : f32 to vector<8x128xf32>
    %34 = arith.mulf %33, %32 : vector<8x128xf32>
    %35 = arith.subf %17, %34 : vector<8x128xf32>
    %36 = arith.addf %15, %35 : vector<8x128xf32>
    %c1_29 = arith.constant 1 : index
    %c2_30 = arith.constant 2 : index
    %c0_31 = arith.constant 0 : index
    %c0_32 = arith.constant 0 : index
    %c0_33 = arith.constant 0 : index
    %37 = vector.load %arg1[%c1_29, %c2_30, %c0_31, %c0_32, %c0_33] : memref<8x4x1x8x128xf32, #tpu.memory_space<vmem>>, vector<1x1x1x8x128xf32>
    %38 = vector.shape_cast %37 : vector<1x1x1x8x128xf32> to vector<8x128xf32>
    %39 = arith.minimumf %4, %7 : vector<8x128xf32>
    %40 = arith.minimumf %39, %36 : vector<8x128xf32>
    %41 = arith.subf %40, %4 : vector<8x128xf32>
    %cst_34 = arith.constant 1.000000e+01 : f32
    %42 = vector.broadcast %cst_34 : f32 to vector<8x128xf32>
    %43 = arith.mulf %41, %42 : vector<8x128xf32>
    %44 = math.exp %43 : vector<8x128xf32>
    %45 = arith.subf %40, %7 : vector<8x128xf32>
    %cst_35 = arith.constant 1.000000e+01 : f32
    %46 = vector.broadcast %cst_35 : f32 to vector<8x128xf32>
    %47 = arith.mulf %45, %46 : vector<8x128xf32>
    %48 = math.exp %47 : vector<8x128xf32>
    %49 = arith.addf %44, %48 : vector<8x128xf32>
    %50 = arith.subf %40, %36 : vector<8x128xf32>
    %cst_36 = arith.constant 1.000000e+01 : f32
    %51 = vector.broadcast %cst_36 : f32 to vector<8x128xf32>
    %52 = arith.mulf %50, %51 : vector<8x128xf32>
    %53 = math.exp %52 : vector<8x128xf32>
    %54 = arith.addf %49, %53 : vector<8x128xf32>
    %55 = math.log %54 : vector<8x128xf32>
    %cst_37 = arith.constant 1.000000e-01 : f32
    %56 = vector.broadcast %cst_37 : f32 to vector<8x128xf32>
    %57 = arith.mulf %56, %55 : vector<8x128xf32>
    %58 = arith.subf %40, %57 : vector<8x128xf32>
    %59 = arith.addf %38, %58 : vector<8x128xf32>
    %c1_38 = arith.constant 1 : index
    %c3_39 = arith.constant 3 : index
    %c0_40 = arith.constant 0 : index
    %c0_41 = arith.constant 0 : index
    %c0_42 = arith.constant 0 : index
    %60 = vector.load %arg1[%c1_38, %c3_39, %c0_40, %c0_41, %c0_42] : memref<8x4x1x8x128xf32, #tpu.memory_space<vmem>>, vector<1x1x1x8x128xf32>
    %61 = vector.shape_cast %60 : vector<1x1x1x8x128xf32> to vector<8x128xf32>
    %62 = arith.minimumf %7, %10 : vector<8x128xf32>
    %63 = arith.minimumf %62, %59 : vector<8x128xf32>
    %64 = arith.subf %63, %7 : vector<8x128xf32>
    %cst_43 = arith.constant 1.000000e+01 : f32
    %65 = vector.broadcast %cst_43 : f32 to vector<8x128xf32>
    %66 = arith.mulf %64, %65 : vector<8x128xf32>
    %67 = math.exp %66 : vector<8x128xf32>
    %68 = arith.subf %63, %10 : vector<8x128xf32>
    %cst_44 = arith.constant 1.000000e+01 : f32
    %69 = vector.broadcast %cst_44 : f32 to vector<8x128xf32>
    %70 = arith.mulf %68, %69 : vector<8x128xf32>
    %71 = math.exp %70 : vector<8x128xf32>
    %72 = arith.addf %67, %71 : vector<8x128xf32>
    %73 = arith.subf %63, %59 : vector<8x128xf32>
    %cst_45 = arith.constant 1.000000e+01 : f32
    %74 = vector.broadcast %cst_45 : f32 to vector<8x128xf32>
    %75 = arith.mulf %73, %74 : vector<8x128xf32>
    %76 = math.exp %75 : vector<8x128xf32>
    %77 = arith.addf %72, %76 : vector<8x128xf32>
    %78 = math.log %77 : vector<8x128xf32>
    %cst_46 = arith.constant 1.000000e-01 : f32
    %79 = vector.broadcast %cst_46 : f32 to vector<8x128xf32>
    %80 = arith.mulf %79, %78 : vector<8x128xf32>
    %81 = arith.subf %63, %80 : vector<8x128xf32>
    %82 = arith.addf %61, %81 : vector<8x128xf32>
    %c2_47 = arith.constant 2 : index
    %c0_48 = arith.constant 0 : index
    %c0_49 = arith.constant 0 : index
    %c0_50 = arith.constant 0 : index
    %c0_51 = arith.constant 0 : index
    %83 = vector.load %arg1[%c2_47, %c0_48, %c0_49, %c0_50, %c0_51] : memref<8x4x1x8x128xf32, #tpu.memory_space<vmem>>, vector<1x1x1x8x128xf32>
    %84 = vector.shape_cast %83 : vector<1x1x1x8x128xf32> to vector<8x128xf32>
    %85 = arith.addf %84, %13 : vector<8x128xf32>
    %c2_52 = arith.constant 2 : index
    %c1_53 = arith.constant 1 : index
    %c0_54 = arith.constant 0 : index
    %c0_55 = arith.constant 0 : index
    %c0_56 = arith.constant 0 : index
    %86 = vector.load %arg1[%c2_52, %c1_53, %c0_54, %c0_55, %c0_56] : memref<8x4x1x8x128xf32, #tpu.memory_space<vmem>>, vector<1x1x1x8x128xf32>
    %87 = vector.shape_cast %86 : vector<1x1x1x8x128xf32> to vector<8x128xf32>
    %88 = arith.minimumf %13, %36 : vector<8x128xf32>
    %89 = arith.minimumf %88, %85 : vector<8x128xf32>
    %90 = arith.subf %89, %13 : vector<8x128xf32>
    %cst_57 = arith.constant 1.000000e+01 : f32
    %91 = vector.broadcast %cst_57 : f32 to vector<8x128xf32>
    %92 = arith.mulf %90, %91 : vector<8x128xf32>
    %93 = math.exp %92 : vector<8x128xf32>
    %94 = arith.subf %89, %36 : vector<8x128xf32>
    %cst_58 = arith.constant 1.000000e+01 : f32
    %95 = vector.broadcast %cst_58 : f32 to vector<8x128xf32>
    %96 = arith.mulf %94, %95 : vector<8x128xf32>
    %97 = math.exp %96 : vector<8x128xf32>
    %98 = arith.addf %93, %97 : vector<8x128xf32>
    %99 = arith.subf %89, %85 : vector<8x128xf32>
    %cst_59 = arith.constant 1.000000e+01 : f32
    %100 = vector.broadcast %cst_59 : f32 to vector<8x128xf32>
    %101 = arith.mulf %99, %100 : vector<8x128xf32>
    %102 = math.exp %101 : vector<8x128xf32>
    %103 = arith.addf %98, %102 : vector<8x128xf32>
    %104 = math.log %103 : vector<8x128xf32>
    %cst_60 = arith.constant 1.000000e-01 : f32
    %105 = vector.broadcast %cst_60 : f32 to vector<8x128xf32>
    %106 = arith.mulf %105, %104 : vector<8x128xf32>
    %107 = arith.subf %89, %106 : vector<8x128xf32>
    %108 = arith.addf %87, %107 : vector<8x128xf32>
    %c2_61 = arith.constant 2 : index
    %c2_62 = arith.constant 2 : index
    %c0_63 = arith.constant 0 : index
    %c0_64 = arith.constant 0 : index
    %c0_65 = arith.constant 0 : index
    %109 = vector.load %arg1[%c2_61, %c2_62, %c0_63, %c0_64, %c0_65] : memref<8x4x1x8x128xf32, #tpu.memory_space<vmem>>, vector<1x1x1x8x128xf32>
    %110 = vector.shape_cast %109 : vector<1x1x1x8x128xf32> to vector<8x128xf32>
    %111 = arith.minimumf %36, %59 : vector<8x128xf32>
    %112 = arith.minimumf %111, %108 : vector<8x128xf32>
    %113 = arith.subf %112, %36 : vector<8x128xf32>
    %cst_66 = arith.constant 1.000000e+01 : f32
    %114 = vector.broadcast %cst_66 : f32 to vector<8x128xf32>
    %115 = arith.mulf %113, %114 : vector<8x128xf32>
    %116 = math.exp %115 : vector<8x128xf32>
    %117 = arith.subf %112, %59 : vector<8x128xf32>
    %cst_67 = arith.constant 1.000000e+01 : f32
    %118 = vector.broadcast %cst_67 : f32 to vector<8x128xf32>
    %119 = arith.mulf %117, %118 : vector<8x128xf32>
    %120 = math.exp %119 : vector<8x128xf32>
    %121 = arith.addf %116, %120 : vector<8x128xf32>
    %122 = arith.subf %112, %108 : vector<8x128xf32>
    %cst_68 = arith.constant 1.000000e+01 : f32
    %123 = vector.broadcast %cst_68 : f32 to vector<8x128xf32>
    %124 = arith.mulf %122, %123 : vector<8x128xf32>
    %125 = math.exp %124 : vector<8x128xf32>
    %126 = arith.addf %121, %125 : vector<8x128xf32>
    %127 = math.log %126 : vector<8x128xf32>
    %cst_69 = arith.constant 1.000000e-01 : f32
    %128 = vector.broadcast %cst_69 : f32 to vector<8x128xf32>
    %129 = arith.mulf %128, %127 : vector<8x128xf32>
    %130 = arith.subf %112, %129 : vector<8x128xf32>
    %131 = arith.addf %110, %130 : vector<8x128xf32>
    %c2_70 = arith.constant 2 : index
    %c3_71 = arith.constant 3 : index
    %c0_72 = arith.constant 0 : index
    %c0_73 = arith.constant 0 : index
    %c0_74 = arith.constant 0 : index
    %132 = vector.load %arg1[%c2_70, %c3_71, %c0_72, %c0_73, %c0_74] : memref<8x4x1x8x128xf32, #tpu.memory_space<vmem>>, vector<1x1x1x8x128xf32>
    %133 = vector.shape_cast %132 : vector<1x1x1x8x128xf32> to vector<8x128xf32>
    %134 = arith.minimumf %59, %82 : vector<8x128xf32>
    %135 = arith.minimumf %134, %131 : vector<8x128xf32>
    %136 = arith.subf %135, %59 : vector<8x128xf32>
    %cst_75 = arith.constant 1.000000e+01 : f32
    %137 = vector.broadcast %cst_75 : f32 to vector<8x128xf32>
    %138 = arith.mulf %136, %137 : vector<8x128xf32>
    %139 = math.exp %138 : vector<8x128xf32>
    %140 = arith.subf %135, %82 : vector<8x128xf32>
    %cst_76 = arith.constant 1.000000e+01 : f32
    %141 = vector.broadcast %cst_76 : f32 to vector<8x128xf32>
    %142 = arith.mulf %140, %141 : vector<8x128xf32>
    %143 = math.exp %142 : vector<8x128xf32>
    %144 = arith.addf %139, %143 : vector<8x128xf32>
    %145 = arith.subf %135, %131 : vector<8x128xf32>
    %cst_77 = arith.constant 1.000000e+01 : f32
    %146 = vector.broadcast %cst_77 : f32 to vector<8x128xf32>
    %147 = arith.mulf %145, %146 : vector<8x128xf32>
    %148 = math.exp %147 : vector<8x128xf32>
    %149 = arith.addf %144, %148 : vector<8x128xf32>
    %150 = math.log %149 : vector<8x128xf32>
    %cst_78 = arith.constant 1.000000e-01 : f32
    %151 = vector.broadcast %cst_78 : f32 to vector<8x128xf32>
    %152 = arith.mulf %151, %150 : vector<8x128xf32>
    %153 = arith.subf %135, %152 : vector<8x128xf32>
    %154 = arith.addf %133, %153 : vector<8x128xf32>
    %c3_79 = arith.constant 3 : index
    %c0_80 = arith.constant 0 : index
    %c0_81 = arith.constant 0 : index
    %c0_82 = arith.constant 0 : index
    %c0_83 = arith.constant 0 : index
    %155 = vector.load %arg1[%c3_79, %c0_80, %c0_81, %c0_82, %c0_83] : memref<8x4x1x8x128xf32, #tpu.memory_space<vmem>>, vector<1x1x1x8x128xf32>
    %156 = vector.shape_cast %155 : vector<1x1x1x8x128xf32> to vector<8x128xf32>
    %157 = arith.addf %156, %85 : vector<8x128xf32>
    %c3_84 = arith.constant 3 : index
    %c1_85 = arith.constant 1 : index
    %c0_86 = arith.constant 0 : index
    %c0_87 = arith.constant 0 : index
    %c0_88 = arith.constant 0 : index
    %158 = vector.load %arg1[%c3_84, %c1_85, %c0_86, %c0_87, %c0_88] : memref<8x4x1x8x128xf32, #tpu.memory_space<vmem>>, vector<1x1x1x8x128xf32>
    %159 = vector.shape_cast %158 : vector<1x1x1x8x128xf32> to vector<8x128xf32>
    %160 = arith.minimumf %85, %108 : vector<8x128xf32>
    %161 = arith.minimumf %160, %157 : vector<8x128xf32>
    %162 = arith.subf %161, %85 : vector<8x128xf32>
    %cst_89 = arith.constant 1.000000e+01 : f32
    %163 = vector.broadcast %cst_89 : f32 to vector<8x128xf32>
    %164 = arith.mulf %162, %163 : vector<8x128xf32>
    %165 = math.exp %164 : vector<8x128xf32>
    %166 = arith.subf %161, %108 : vector<8x128xf32>
    %cst_90 = arith.constant 1.000000e+01 : f32
    %167 = vector.broadcast %cst_90 : f32 to vector<8x128xf32>
    %168 = arith.mulf %166, %167 : vector<8x128xf32>
    %169 = math.exp %168 : vector<8x128xf32>
    %170 = arith.addf %165, %169 : vector<8x128xf32>
    %171 = arith.subf %161, %157 : vector<8x128xf32>
    %cst_91 = arith.constant 1.000000e+01 : f32
    %172 = vector.broadcast %cst_91 : f32 to vector<8x128xf32>
    %173 = arith.mulf %171, %172 : vector<8x128xf32>
    %174 = math.exp %173 : vector<8x128xf32>
    %175 = arith.addf %170, %174 : vector<8x128xf32>
    %176 = math.log %175 : vector<8x128xf32>
    %cst_92 = arith.constant 1.000000e-01 : f32
    %177 = vector.broadcast %cst_92 : f32 to vector<8x128xf32>
    %178 = arith.mulf %177, %176 : vector<8x128xf32>
    %179 = arith.subf %161, %178 : vector<8x128xf32>
    %180 = arith.addf %159, %179 : vector<8x128xf32>
    %c3_93 = arith.constant 3 : index
    %c2_94 = arith.constant 2 : index
    %c0_95 = arith.constant 0 : index
    %c0_96 = arith.constant 0 : index
    %c0_97 = arith.constant 0 : index
    %181 = vector.load %arg1[%c3_93, %c2_94, %c0_95, %c0_96, %c0_97] : memref<8x4x1x8x128xf32, #tpu.memory_space<vmem>>, vector<1x1x1x8x128xf32>
    %182 = vector.shape_cast %181 : vector<1x1x1x8x128xf32> to vector<8x128xf32>
    %183 = arith.minimumf %108, %131 : vector<8x128xf32>
    %184 = arith.minimumf %183, %180 : vector<8x128xf32>
    %185 = arith.subf %184, %108 : vector<8x128xf32>
    %cst_98 = arith.constant 1.000000e+01 : f32
    %186 = vector.broadcast %cst_98 : f32 to vector<8x128xf32>
    %187 = arith.mulf %185, %186 : vector<8x128xf32>
    %188 = math.exp %187 : vector<8x128xf32>
    %189 = arith.subf %184, %131 : vector<8x128xf32>
    %cst_99 = arith.constant 1.000000e+01 : f32
    %190 = vector.broadcast %cst_99 : f32 to vector<8x128xf32>
    %191 = arith.mulf %189, %190 : vector<8x128xf32>
    %192 = math.exp %191 : vector<8x128xf32>
    %193 = arith.addf %188, %192 : vector<8x128xf32>
    %194 = arith.subf %184, %180 : vector<8x128xf32>
    %cst_100 = arith.constant 1.000000e+01 : f32
    %195 = vector.broadcast %cst_100 : f32 to vector<8x128xf32>
    %196 = arith.mulf %194, %195 : vector<8x128xf32>
    %197 = math.exp %196 : vector<8x128xf32>
    %198 = arith.addf %193, %197 : vector<8x128xf32>
    %199 = math.log %198 : vector<8x128xf32>
    %cst_101 = arith.constant 1.000000e-01 : f32
    %200 = vector.broadcast %cst_101 : f32 to vector<8x128xf32>
    %201 = arith.mulf %200, %199 : vector<8x128xf32>
    %202 = arith.subf %184, %201 : vector<8x128xf32>
    %203 = arith.addf %182, %202 : vector<8x128xf32>
    %c3_102 = arith.constant 3 : index
    %c3_103 = arith.constant 3 : index
    %c0_104 = arith.constant 0 : index
    %c0_105 = arith.constant 0 : index
    %c0_106 = arith.constant 0 : index
    %204 = vector.load %arg1[%c3_102, %c3_103, %c0_104, %c0_105, %c0_106] : memref<8x4x1x8x128xf32, #tpu.memory_space<vmem>>, vector<1x1x1x8x128xf32>
    %205 = vector.shape_cast %204 : vector<1x1x1x8x128xf32> to vector<8x128xf32>
    %206 = arith.minimumf %131, %154 : vector<8x128xf32>
    %207 = arith.minimumf %206, %203 : vector<8x128xf32>
    %208 = arith.subf %207, %131 : vector<8x128xf32>
    %cst_107 = arith.constant 1.000000e+01 : f32
    %209 = vector.broadcast %cst_107 : f32 to vector<8x128xf32>
    %210 = arith.mulf %208, %209 : vector<8x128xf32>
    %211 = math.exp %210 : vector<8x128xf32>
    %212 = arith.subf %207, %154 : vector<8x128xf32>
    %cst_108 = arith.constant 1.000000e+01 : f32
    %213 = vector.broadcast %cst_108 : f32 to vector<8x128xf32>
    %214 = arith.mulf %212, %213 : vector<8x128xf32>
    %215 = math.exp %214 : vector<8x128xf32>
    %216 = arith.addf %211, %215 : vector<8x128xf32>
    %217 = arith.subf %207, %203 : vector<8x128xf32>
    %cst_109 = arith.constant 1.000000e+01 : f32
    %218 = vector.broadcast %cst_109 : f32 to vector<8x128xf32>
    %219 = arith.mulf %217, %218 : vector<8x128xf32>
    %220 = math.exp %219 : vector<8x128xf32>
    %221 = arith.addf %216, %220 : vector<8x128xf32>
    %222 = math.log %221 : vector<8x128xf32>
    %cst_110 = arith.constant 1.000000e-01 : f32
    %223 = vector.broadcast %cst_110 : f32 to vector<8x128xf32>
    %224 = arith.mulf %223, %222 : vector<8x128xf32>
    %225 = arith.subf %207, %224 : vector<8x128xf32>
    %226 = arith.addf %205, %225 : vector<8x128xf32>
    %c4 = arith.constant 4 : index
    %c0_111 = arith.constant 0 : index
    %c0_112 = arith.constant 0 : index
    %c0_113 = arith.constant 0 : index
    %c0_114 = arith.constant 0 : index
    %227 = vector.load %arg1[%c4, %c0_111, %c0_112, %c0_113, %c0_114] : memref<8x4x1x8x128xf32, #tpu.memory_space<vmem>>, vector<1x1x1x8x128xf32>
    %228 = vector.shape_cast %227 : vector<1x1x1x8x128xf32> to vector<8x128xf32>
    %229 = arith.addf %228, %157 : vector<8x128xf32>
    %c4_115 = arith.constant 4 : index
    %c1_116 = arith.constant 1 : index
    %c0_117 = arith.constant 0 : index
    %c0_118 = arith.constant 0 : index
    %c0_119 = arith.constant 0 : index
    %230 = vector.load %arg1[%c4_115, %c1_116, %c0_117, %c0_118, %c0_119] : memref<8x4x1x8x128xf32, #tpu.memory_space<vmem>>, vector<1x1x1x8x128xf32>
    %231 = vector.shape_cast %230 : vector<1x1x1x8x128xf32> to vector<8x128xf32>
    %232 = arith.minimumf %157, %180 : vector<8x128xf32>
    %233 = arith.minimumf %232, %229 : vector<8x128xf32>
    %234 = arith.subf %233, %157 : vector<8x128xf32>
    %cst_120 = arith.constant 1.000000e+01 : f32
    %235 = vector.broadcast %cst_120 : f32 to vector<8x128xf32>
    %236 = arith.mulf %234, %235 : vector<8x128xf32>
    %237 = math.exp %236 : vector<8x128xf32>
    %238 = arith.subf %233, %180 : vector<8x128xf32>
    %cst_121 = arith.constant 1.000000e+01 : f32
    %239 = vector.broadcast %cst_121 : f32 to vector<8x128xf32>
    %240 = arith.mulf %238, %239 : vector<8x128xf32>
    %241 = math.exp %240 : vector<8x128xf32>
    %242 = arith.addf %237, %241 : vector<8x128xf32>
    %243 = arith.subf %233, %229 : vector<8x128xf32>
    %cst_122 = arith.constant 1.000000e+01 : f32
    %244 = vector.broadcast %cst_122 : f32 to vector<8x128xf32>
    %245 = arith.mulf %243, %244 : vector<8x128xf32>
    %246 = math.exp %245 : vector<8x128xf32>
    %247 = arith.addf %242, %246 : vector<8x128xf32>
    %248 = math.log %247 : vector<8x128xf32>
    %cst_123 = arith.constant 1.000000e-01 : f32
    %249 = vector.broadcast %cst_123 : f32 to vector<8x128xf32>
    %250 = arith.mulf %249, %248 : vector<8x128xf32>
    %251 = arith.subf %233, %250 : vector<8x128xf32>
    %252 = arith.addf %231, %251 : vector<8x128xf32>
    %c4_124 = arith.constant 4 : index
    %c2_125 = arith.constant 2 : index
    %c0_126 = arith.constant 0 : index
    %c0_127 = arith.constant 0 : index
    %c0_128 = arith.constant 0 : index
    %253 = vector.load %arg1[%c4_124, %c2_125, %c0_126, %c0_127, %c0_128] : memref<8x4x1x8x128xf32, #tpu.memory_space<vmem>>, vector<1x1x1x8x128xf32>
    %254 = vector.shape_cast %253 : vector<1x1x1x8x128xf32> to vector<8x128xf32>
    %255 = arith.minimumf %180, %203 : vector<8x128xf32>
    %256 = arith.minimumf %255, %252 : vector<8x128xf32>
    %257 = arith.subf %256, %180 : vector<8x128xf32>
    %cst_129 = arith.constant 1.000000e+01 : f32
    %258 = vector.broadcast %cst_129 : f32 to vector<8x128xf32>
    %259 = arith.mulf %257, %258 : vector<8x128xf32>
    %260 = math.exp %259 : vector<8x128xf32>
    %261 = arith.subf %256, %203 : vector<8x128xf32>
    %cst_130 = arith.constant 1.000000e+01 : f32
    %262 = vector.broadcast %cst_130 : f32 to vector<8x128xf32>
    %263 = arith.mulf %261, %262 : vector<8x128xf32>
    %264 = math.exp %263 : vector<8x128xf32>
    %265 = arith.addf %260, %264 : vector<8x128xf32>
    %266 = arith.subf %256, %252 : vector<8x128xf32>
    %cst_131 = arith.constant 1.000000e+01 : f32
    %267 = vector.broadcast %cst_131 : f32 to vector<8x128xf32>
    %268 = arith.mulf %266, %267 : vector<8x128xf32>
    %269 = math.exp %268 : vector<8x128xf32>
    %270 = arith.addf %265, %269 : vector<8x128xf32>
    %271 = math.log %270 : vector<8x128xf32>
    %cst_132 = arith.constant 1.000000e-01 : f32
    %272 = vector.broadcast %cst_132 : f32 to vector<8x128xf32>
    %273 = arith.mulf %272, %271 : vector<8x128xf32>
    %274 = arith.subf %256, %273 : vector<8x128xf32>
    %275 = arith.addf %254, %274 : vector<8x128xf32>
    %c4_133 = arith.constant 4 : index
    %c3_134 = arith.constant 3 : index
    %c0_135 = arith.constant 0 : index
    %c0_136 = arith.constant 0 : index
    %c0_137 = arith.constant 0 : index
    %276 = vector.load %arg1[%c4_133, %c3_134, %c0_135, %c0_136, %c0_137] : memref<8x4x1x8x128xf32, #tpu.memory_space<vmem>>, vector<1x1x1x8x128xf32>
    %277 = vector.shape_cast %276 : vector<1x1x1x8x128xf32> to vector<8x128xf32>
    %278 = arith.minimumf %203, %226 : vector<8x128xf32>
    %279 = arith.minimumf %278, %275 : vector<8x128xf32>
    %280 = arith.subf %279, %203 : vector<8x128xf32>
    %cst_138 = arith.constant 1.000000e+01 : f32
    %281 = vector.broadcast %cst_138 : f32 to vector<8x128xf32>
    %282 = arith.mulf %280, %281 : vector<8x128xf32>
    %283 = math.exp %282 : vector<8x128xf32>
    %284 = arith.subf %279, %226 : vector<8x128xf32>
    %cst_139 = arith.constant 1.000000e+01 : f32
    %285 = vector.broadcast %cst_139 : f32 to vector<8x128xf32>
    %286 = arith.mulf %284, %285 : vector<8x128xf32>
    %287 = math.exp %286 : vector<8x128xf32>
    %288 = arith.addf %283, %287 : vector<8x128xf32>
    %289 = arith.subf %279, %275 : vector<8x128xf32>
    %cst_140 = arith.constant 1.000000e+01 : f32
    %290 = vector.broadcast %cst_140 : f32 to vector<8x128xf32>
    %291 = arith.mulf %289, %290 : vector<8x128xf32>
    %292 = math.exp %291 : vector<8x128xf32>
    %293 = arith.addf %288, %292 : vector<8x128xf32>
    %294 = math.log %293 : vector<8x128xf32>
    %cst_141 = arith.constant 1.000000e-01 : f32
    %295 = vector.broadcast %cst_141 : f32 to vector<8x128xf32>
    %296 = arith.mulf %295, %294 : vector<8x128xf32>
    %297 = arith.subf %279, %296 : vector<8x128xf32>
    %298 = arith.addf %277, %297 : vector<8x128xf32>
    %c5 = arith.constant 5 : index
    %c0_142 = arith.constant 0 : index
    %c0_143 = arith.constant 0 : index
    %c0_144 = arith.constant 0 : index
    %c0_145 = arith.constant 0 : index
    %299 = vector.load %arg1[%c5, %c0_142, %c0_143, %c0_144, %c0_145] : memref<8x4x1x8x128xf32, #tpu.memory_space<vmem>>, vector<1x1x1x8x128xf32>
    %300 = vector.shape_cast %299 : vector<1x1x1x8x128xf32> to vector<8x128xf32>
    %301 = arith.addf %300, %229 : vector<8x128xf32>
    %c5_146 = arith.constant 5 : index
    %c1_147 = arith.constant 1 : index
    %c0_148 = arith.constant 0 : index
    %c0_149 = arith.constant 0 : index
    %c0_150 = arith.constant 0 : index
    %302 = vector.load %arg1[%c5_146, %c1_147, %c0_148, %c0_149, %c0_150] : memref<8x4x1x8x128xf32, #tpu.memory_space<vmem>>, vector<1x1x1x8x128xf32>
    %303 = vector.shape_cast %302 : vector<1x1x1x8x128xf32> to vector<8x128xf32>
    %304 = arith.minimumf %229, %252 : vector<8x128xf32>
    %305 = arith.minimumf %304, %301 : vector<8x128xf32>
    %306 = arith.subf %305, %229 : vector<8x128xf32>
    %cst_151 = arith.constant 1.000000e+01 : f32
    %307 = vector.broadcast %cst_151 : f32 to vector<8x128xf32>
    %308 = arith.mulf %306, %307 : vector<8x128xf32>
    %309 = math.exp %308 : vector<8x128xf32>
    %310 = arith.subf %305, %252 : vector<8x128xf32>
    %cst_152 = arith.constant 1.000000e+01 : f32
    %311 = vector.broadcast %cst_152 : f32 to vector<8x128xf32>
    %312 = arith.mulf %310, %311 : vector<8x128xf32>
    %313 = math.exp %312 : vector<8x128xf32>
    %314 = arith.addf %309, %313 : vector<8x128xf32>
    %315 = arith.subf %305, %301 : vector<8x128xf32>
    %cst_153 = arith.constant 1.000000e+01 : f32
    %316 = vector.broadcast %cst_153 : f32 to vector<8x128xf32>
    %317 = arith.mulf %315, %316 : vector<8x128xf32>
    %318 = math.exp %317 : vector<8x128xf32>
    %319 = arith.addf %314, %318 : vector<8x128xf32>
    %320 = math.log %319 : vector<8x128xf32>
    %cst_154 = arith.constant 1.000000e-01 : f32
    %321 = vector.broadcast %cst_154 : f32 to vector<8x128xf32>
    %322 = arith.mulf %321, %320 : vector<8x128xf32>
    %323 = arith.subf %305, %322 : vector<8x128xf32>
    %324 = arith.addf %303, %323 : vector<8x128xf32>
    %c5_155 = arith.constant 5 : index
    %c2_156 = arith.constant 2 : index
    %c0_157 = arith.constant 0 : index
    %c0_158 = arith.constant 0 : index
    %c0_159 = arith.constant 0 : index
    %325 = vector.load %arg1[%c5_155, %c2_156, %c0_157, %c0_158, %c0_159] : memref<8x4x1x8x128xf32, #tpu.memory_space<vmem>>, vector<1x1x1x8x128xf32>
    %326 = vector.shape_cast %325 : vector<1x1x1x8x128xf32> to vector<8x128xf32>
    %327 = arith.minimumf %252, %275 : vector<8x128xf32>
    %328 = arith.minimumf %327, %324 : vector<8x128xf32>
    %329 = arith.subf %328, %252 : vector<8x128xf32>
    %cst_160 = arith.constant 1.000000e+01 : f32
    %330 = vector.broadcast %cst_160 : f32 to vector<8x128xf32>
    %331 = arith.mulf %329, %330 : vector<8x128xf32>
    %332 = math.exp %331 : vector<8x128xf32>
    %333 = arith.subf %328, %275 : vector<8x128xf32>
    %cst_161 = arith.constant 1.000000e+01 : f32
    %334 = vector.broadcast %cst_161 : f32 to vector<8x128xf32>
    %335 = arith.mulf %333, %334 : vector<8x128xf32>
    %336 = math.exp %335 : vector<8x128xf32>
    %337 = arith.addf %332, %336 : vector<8x128xf32>
    %338 = arith.subf %328, %324 : vector<8x128xf32>
    %cst_162 = arith.constant 1.000000e+01 : f32
    %339 = vector.broadcast %cst_162 : f32 to vector<8x128xf32>
    %340 = arith.mulf %338, %339 : vector<8x128xf32>
    %341 = math.exp %340 : vector<8x128xf32>
    %342 = arith.addf %337, %341 : vector<8x128xf32>
    %343 = math.log %342 : vector<8x128xf32>
    %cst_163 = arith.constant 1.000000e-01 : f32
    %344 = vector.broadcast %cst_163 : f32 to vector<8x128xf32>
    %345 = arith.mulf %344, %343 : vector<8x128xf32>
    %346 = arith.subf %328, %345 : vector<8x128xf32>
    %347 = arith.addf %326, %346 : vector<8x128xf32>
    %c5_164 = arith.constant 5 : index
    %c3_165 = arith.constant 3 : index
    %c0_166 = arith.constant 0 : index
    %c0_167 = arith.constant 0 : index
    %c0_168 = arith.constant 0 : index
    %348 = vector.load %arg1[%c5_164, %c3_165, %c0_166, %c0_167, %c0_168] : memref<8x4x1x8x128xf32, #tpu.memory_space<vmem>>, vector<1x1x1x8x128xf32>
    %349 = vector.shape_cast %348 : vector<1x1x1x8x128xf32> to vector<8x128xf32>
    %350 = arith.minimumf %275, %298 : vector<8x128xf32>
    %351 = arith.minimumf %350, %347 : vector<8x128xf32>
    %352 = arith.subf %351, %275 : vector<8x128xf32>
    %cst_169 = arith.constant 1.000000e+01 : f32
    %353 = vector.broadcast %cst_169 : f32 to vector<8x128xf32>
    %354 = arith.mulf %352, %353 : vector<8x128xf32>
    %355 = math.exp %354 : vector<8x128xf32>
    %356 = arith.subf %351, %298 : vector<8x128xf32>
    %cst_170 = arith.constant 1.000000e+01 : f32
    %357 = vector.broadcast %cst_170 : f32 to vector<8x128xf32>
    %358 = arith.mulf %356, %357 : vector<8x128xf32>
    %359 = math.exp %358 : vector<8x128xf32>
    %360 = arith.addf %355, %359 : vector<8x128xf32>
    %361 = arith.subf %351, %347 : vector<8x128xf32>
    %cst_171 = arith.constant 1.000000e+01 : f32
    %362 = vector.broadcast %cst_171 : f32 to vector<8x128xf32>
    %363 = arith.mulf %361, %362 : vector<8x128xf32>
    %364 = math.exp %363 : vector<8x128xf32>
    %365 = arith.addf %360, %364 : vector<8x128xf32>
    %366 = math.log %365 : vector<8x128xf32>
    %cst_172 = arith.constant 1.000000e-01 : f32
    %367 = vector.broadcast %cst_172 : f32 to vector<8x128xf32>
    %368 = arith.mulf %367, %366 : vector<8x128xf32>
    %369 = arith.subf %351, %368 : vector<8x128xf32>
    %370 = arith.addf %349, %369 : vector<8x128xf32>
    %c6 = arith.constant 6 : index
    %c0_173 = arith.constant 0 : index
    %c0_174 = arith.constant 0 : index
    %c0_175 = arith.constant 0 : index
    %c0_176 = arith.constant 0 : index
    %371 = vector.load %arg1[%c6, %c0_173, %c0_174, %c0_175, %c0_176] : memref<8x4x1x8x128xf32, #tpu.memory_space<vmem>>, vector<1x1x1x8x128xf32>
    %372 = vector.shape_cast %371 : vector<1x1x1x8x128xf32> to vector<8x128xf32>
    %373 = arith.addf %372, %301 : vector<8x128xf32>
    %c6_177 = arith.constant 6 : index
    %c1_178 = arith.constant 1 : index
    %c0_179 = arith.constant 0 : index
    %c0_180 = arith.constant 0 : index
    %c0_181 = arith.constant 0 : index
    %374 = vector.load %arg1[%c6_177, %c1_178, %c0_179, %c0_180, %c0_181] : memref<8x4x1x8x128xf32, #tpu.memory_space<vmem>>, vector<1x1x1x8x128xf32>
    %375 = vector.shape_cast %374 : vector<1x1x1x8x128xf32> to vector<8x128xf32>
    %376 = arith.minimumf %301, %324 : vector<8x128xf32>
    %377 = arith.minimumf %376, %373 : vector<8x128xf32>
    %378 = arith.subf %377, %301 : vector<8x128xf32>
    %cst_182 = arith.constant 1.000000e+01 : f32
    %379 = vector.broadcast %cst_182 : f32 to vector<8x128xf32>
    %380 = arith.mulf %378, %379 : vector<8x128xf32>
    %381 = math.exp %380 : vector<8x128xf32>
    %382 = arith.subf %377, %324 : vector<8x128xf32>
    %cst_183 = arith.constant 1.000000e+01 : f32
    %383 = vector.broadcast %cst_183 : f32 to vector<8x128xf32>
    %384 = arith.mulf %382, %383 : vector<8x128xf32>
    %385 = math.exp %384 : vector<8x128xf32>
    %386 = arith.addf %381, %385 : vector<8x128xf32>
    %387 = arith.subf %377, %373 : vector<8x128xf32>
    %cst_184 = arith.constant 1.000000e+01 : f32
    %388 = vector.broadcast %cst_184 : f32 to vector<8x128xf32>
    %389 = arith.mulf %387, %388 : vector<8x128xf32>
    %390 = math.exp %389 : vector<8x128xf32>
    %391 = arith.addf %386, %390 : vector<8x128xf32>
    %392 = math.log %391 : vector<8x128xf32>
    %cst_185 = arith.constant 1.000000e-01 : f32
    %393 = vector.broadcast %cst_185 : f32 to vector<8x128xf32>
    %394 = arith.mulf %393, %392 : vector<8x128xf32>
    %395 = arith.subf %377, %394 : vector<8x128xf32>
    %396 = arith.addf %375, %395 : vector<8x128xf32>
    %c6_186 = arith.constant 6 : index
    %c2_187 = arith.constant 2 : index
    %c0_188 = arith.constant 0 : index
    %c0_189 = arith.constant 0 : index
    %c0_190 = arith.constant 0 : index
    %397 = vector.load %arg1[%c6_186, %c2_187, %c0_188, %c0_189, %c0_190] : memref<8x4x1x8x128xf32, #tpu.memory_space<vmem>>, vector<1x1x1x8x128xf32>
    %398 = vector.shape_cast %397 : vector<1x1x1x8x128xf32> to vector<8x128xf32>
    %399 = arith.minimumf %324, %347 : vector<8x128xf32>
    %400 = arith.minimumf %399, %396 : vector<8x128xf32>
    %401 = arith.subf %400, %324 : vector<8x128xf32>
    %cst_191 = arith.constant 1.000000e+01 : f32
    %402 = vector.broadcast %cst_191 : f32 to vector<8x128xf32>
    %403 = arith.mulf %401, %402 : vector<8x128xf32>
    %404 = math.exp %403 : vector<8x128xf32>
    %405 = arith.subf %400, %347 : vector<8x128xf32>
    %cst_192 = arith.constant 1.000000e+01 : f32
    %406 = vector.broadcast %cst_192 : f32 to vector<8x128xf32>
    %407 = arith.mulf %405, %406 : vector<8x128xf32>
    %408 = math.exp %407 : vector<8x128xf32>
    %409 = arith.addf %404, %408 : vector<8x128xf32>
    %410 = arith.subf %400, %396 : vector<8x128xf32>
    %cst_193 = arith.constant 1.000000e+01 : f32
    %411 = vector.broadcast %cst_193 : f32 to vector<8x128xf32>
    %412 = arith.mulf %410, %411 : vector<8x128xf32>
    %413 = math.exp %412 : vector<8x128xf32>
    %414 = arith.addf %409, %413 : vector<8x128xf32>
    %415 = math.log %414 : vector<8x128xf32>
    %cst_194 = arith.constant 1.000000e-01 : f32
    %416 = vector.broadcast %cst_194 : f32 to vector<8x128xf32>
    %417 = arith.mulf %416, %415 : vector<8x128xf32>
    %418 = arith.subf %400, %417 : vector<8x128xf32>
    %419 = arith.addf %398, %418 : vector<8x128xf32>
    %c6_195 = arith.constant 6 : index
    %c3_196 = arith.constant 3 : index
    %c0_197 = arith.constant 0 : index
    %c0_198 = arith.constant 0 : index
    %c0_199 = arith.constant 0 : index
    %420 = vector.load %arg1[%c6_195, %c3_196, %c0_197, %c0_198, %c0_199] : memref<8x4x1x8x128xf32, #tpu.memory_space<vmem>>, vector<1x1x1x8x128xf32>
    %421 = vector.shape_cast %420 : vector<1x1x1x8x128xf32> to vector<8x128xf32>
    %422 = arith.minimumf %347, %370 : vector<8x128xf32>
    %423 = arith.minimumf %422, %419 : vector<8x128xf32>
    %424 = arith.subf %423, %347 : vector<8x128xf32>
    %cst_200 = arith.constant 1.000000e+01 : f32
    %425 = vector.broadcast %cst_200 : f32 to vector<8x128xf32>
    %426 = arith.mulf %424, %425 : vector<8x128xf32>
    %427 = math.exp %426 : vector<8x128xf32>
    %428 = arith.subf %423, %370 : vector<8x128xf32>
    %cst_201 = arith.constant 1.000000e+01 : f32
    %429 = vector.broadcast %cst_201 : f32 to vector<8x128xf32>
    %430 = arith.mulf %428, %429 : vector<8x128xf32>
    %431 = math.exp %430 : vector<8x128xf32>
    %432 = arith.addf %427, %431 : vector<8x128xf32>
    %433 = arith.subf %423, %419 : vector<8x128xf32>
    %cst_202 = arith.constant 1.000000e+01 : f32
    %434 = vector.broadcast %cst_202 : f32 to vector<8x128xf32>
    %435 = arith.mulf %433, %434 : vector<8x128xf32>
    %436 = math.exp %435 : vector<8x128xf32>
    %437 = arith.addf %432, %436 : vector<8x128xf32>
    %438 = math.log %437 : vector<8x128xf32>
    %cst_203 = arith.constant 1.000000e-01 : f32
    %439 = vector.broadcast %cst_203 : f32 to vector<8x128xf32>
    %440 = arith.mulf %439, %438 : vector<8x128xf32>
    %441 = arith.subf %423, %440 : vector<8x128xf32>
    %442 = arith.addf %421, %441 : vector<8x128xf32>
    %c7 = arith.constant 7 : index
    %c0_204 = arith.constant 0 : index
    %c0_205 = arith.constant 0 : index
    %c0_206 = arith.constant 0 : index
    %c0_207 = arith.constant 0 : index
    %443 = vector.load %arg1[%c7, %c0_204, %c0_205, %c0_206, %c0_207] : memref<8x4x1x8x128xf32, #tpu.memory_space<vmem>>, vector<1x1x1x8x128xf32>
    %444 = vector.shape_cast %443 : vector<1x1x1x8x128xf32> to vector<8x128xf32>
    %445 = arith.addf %444, %373 : vector<8x128xf32>
    %c7_208 = arith.constant 7 : index
    %c1_209 = arith.constant 1 : index
    %c0_210 = arith.constant 0 : index
    %c0_211 = arith.constant 0 : index
    %c0_212 = arith.constant 0 : index
    %446 = vector.load %arg1[%c7_208, %c1_209, %c0_210, %c0_211, %c0_212] : memref<8x4x1x8x128xf32, #tpu.memory_space<vmem>>, vector<1x1x1x8x128xf32>
    %447 = vector.shape_cast %446 : vector<1x1x1x8x128xf32> to vector<8x128xf32>
    %448 = arith.minimumf %373, %396 : vector<8x128xf32>
    %449 = arith.minimumf %448, %445 : vector<8x128xf32>
    %450 = arith.subf %449, %373 : vector<8x128xf32>
    %cst_213 = arith.constant 1.000000e+01 : f32
    %451 = vector.broadcast %cst_213 : f32 to vector<8x128xf32>
    %452 = arith.mulf %450, %451 : vector<8x128xf32>
    %453 = math.exp %452 : vector<8x128xf32>
    %454 = arith.subf %449, %396 : vector<8x128xf32>
    %cst_214 = arith.constant 1.000000e+01 : f32
    %455 = vector.broadcast %cst_214 : f32 to vector<8x128xf32>
    %456 = arith.mulf %454, %455 : vector<8x128xf32>
    %457 = math.exp %456 : vector<8x128xf32>
    %458 = arith.addf %453, %457 : vector<8x128xf32>
    %459 = arith.subf %449, %445 : vector<8x128xf32>
    %cst_215 = arith.constant 1.000000e+01 : f32
    %460 = vector.broadcast %cst_215 : f32 to vector<8x128xf32>
    %461 = arith.mulf %459, %460 : vector<8x128xf32>
    %462 = math.exp %461 : vector<8x128xf32>
    %463 = arith.addf %458, %462 : vector<8x128xf32>
    %464 = math.log %463 : vector<8x128xf32>
    %cst_216 = arith.constant 1.000000e-01 : f32
    %465 = vector.broadcast %cst_216 : f32 to vector<8x128xf32>
    %466 = arith.mulf %465, %464 : vector<8x128xf32>
    %467 = arith.subf %449, %466 : vector<8x128xf32>
    %468 = arith.addf %447, %467 : vector<8x128xf32>
    %c7_217 = arith.constant 7 : index
    %c2_218 = arith.constant 2 : index
    %c0_219 = arith.constant 0 : index
    %c0_220 = arith.constant 0 : index
    %c0_221 = arith.constant 0 : index
    %469 = vector.load %arg1[%c7_217, %c2_218, %c0_219, %c0_220, %c0_221] : memref<8x4x1x8x128xf32, #tpu.memory_space<vmem>>, vector<1x1x1x8x128xf32>
    %470 = vector.shape_cast %469 : vector<1x1x1x8x128xf32> to vector<8x128xf32>
    %471 = arith.minimumf %396, %419 : vector<8x128xf32>
    %472 = arith.minimumf %471, %468 : vector<8x128xf32>
    %473 = arith.subf %472, %396 : vector<8x128xf32>
    %cst_222 = arith.constant 1.000000e+01 : f32
    %474 = vector.broadcast %cst_222 : f32 to vector<8x128xf32>
    %475 = arith.mulf %473, %474 : vector<8x128xf32>
    %476 = math.exp %475 : vector<8x128xf32>
    %477 = arith.subf %472, %419 : vector<8x128xf32>
    %cst_223 = arith.constant 1.000000e+01 : f32
    %478 = vector.broadcast %cst_223 : f32 to vector<8x128xf32>
    %479 = arith.mulf %477, %478 : vector<8x128xf32>
    %480 = math.exp %479 : vector<8x128xf32>
    %481 = arith.addf %476, %480 : vector<8x128xf32>
    %482 = arith.subf %472, %468 : vector<8x128xf32>
    %cst_224 = arith.constant 1.000000e+01 : f32
    %483 = vector.broadcast %cst_224 : f32 to vector<8x128xf32>
    %484 = arith.mulf %482, %483 : vector<8x128xf32>
    %485 = math.exp %484 : vector<8x128xf32>
    %486 = arith.addf %481, %485 : vector<8x128xf32>
    %487 = math.log %486 : vector<8x128xf32>
    %cst_225 = arith.constant 1.000000e-01 : f32
    %488 = vector.broadcast %cst_225 : f32 to vector<8x128xf32>
    %489 = arith.mulf %488, %487 : vector<8x128xf32>
    %490 = arith.subf %472, %489 : vector<8x128xf32>
    %491 = arith.addf %470, %490 : vector<8x128xf32>
    %c7_226 = arith.constant 7 : index
    %c3_227 = arith.constant 3 : index
    %c0_228 = arith.constant 0 : index
    %c0_229 = arith.constant 0 : index
    %c0_230 = arith.constant 0 : index
    %492 = vector.load %arg1[%c7_226, %c3_227, %c0_228, %c0_229, %c0_230] : memref<8x4x1x8x128xf32, #tpu.memory_space<vmem>>, vector<1x1x1x8x128xf32>
    %493 = vector.shape_cast %492 : vector<1x1x1x8x128xf32> to vector<8x128xf32>
    %494 = arith.minimumf %419, %442 : vector<8x128xf32>
    %495 = arith.minimumf %494, %491 : vector<8x128xf32>
    %496 = arith.subf %495, %419 : vector<8x128xf32>
    %cst_231 = arith.constant 1.000000e+01 : f32
    %497 = vector.broadcast %cst_231 : f32 to vector<8x128xf32>
    %498 = arith.mulf %496, %497 : vector<8x128xf32>
    %499 = math.exp %498 : vector<8x128xf32>
    %500 = arith.subf %495, %442 : vector<8x128xf32>
    %cst_232 = arith.constant 1.000000e+01 : f32
    %501 = vector.broadcast %cst_232 : f32 to vector<8x128xf32>
    %502 = arith.mulf %500, %501 : vector<8x128xf32>
    %503 = math.exp %502 : vector<8x128xf32>
    %504 = arith.addf %499, %503 : vector<8x128xf32>
    %505 = arith.subf %495, %491 : vector<8x128xf32>
    %cst_233 = arith.constant 1.000000e+01 : f32
    %506 = vector.broadcast %cst_233 : f32 to vector<8x128xf32>
    %507 = arith.mulf %505, %506 : vector<8x128xf32>
    %508 = math.exp %507 : vector<8x128xf32>
    %509 = arith.addf %504, %508 : vector<8x128xf32>
    %510 = math.log %509 : vector<8x128xf32>
    %cst_234 = arith.constant 1.000000e-01 : f32
    %511 = vector.broadcast %cst_234 : f32 to vector<8x128xf32>
    %512 = arith.mulf %511, %510 : vector<8x128xf32>
    %513 = arith.subf %495, %512 : vector<8x128xf32>
    %514 = arith.addf %493, %513 : vector<8x128xf32>
    %cst_235 = arith.constant 0.0833333358 : f32
    %515 = vector.broadcast %cst_235 : f32 to vector<8x128xf32>
    %516 = arith.mulf %514, %515 : vector<8x128xf32>
    %c0_236 = arith.constant 0 : index
    %c0_237 = arith.constant 0 : index
    %c0_238 = arith.constant 0 : index
    %517 = vector.load %arg2[%c0_236, %c0_237, %c0_238] : memref<1x8x128xf32, #tpu.memory_space<vmem>>, vector<1x8x128xf32>
    %518 = vector.shape_cast %517 : vector<1x8x128xf32> to vector<8x128xf32>
    %519 = vector.shape_cast %516 : vector<8x128xf32> to vector<1x8x128xf32>
    tpu.vector_store %arg2[%c0_236, %c0_237, %c0_238], %519 {strides = array<i32>} : memref<1x8x128xf32, #tpu.memory_space<vmem>>, vector<1x8x128xf32>,
    return
  }
  func.func @transform_0(%arg0: i32) -> (i32, i32, i32, i32, i32) {
    %c0_i32 = arith.constant 0 : i32
    %c0_i32_0 = arith.constant 0 : i32
    %c0_i32_1 = arith.constant 0 : i32
    %c0_i32_2 = arith.constant 0 : i32
    %c0_i32_3 = arith.constant 0 : i32
    return %c0_i32, %c0_i32_0, %arg0, %c0_i32_1, %c0_i32_2 : i32, i32, i32, i32, i32
  }
  func.func @transform_1(%arg0: i32) -> (i32, i32, i32) {
    %c0_i32 = arith.constant 0 : i32
    %c0_i32_0 = arith.constant 0 : i32
    %c0_i32_1 = arith.constant 0 : i32
    return %arg0, %c0_i32, %c0_i32_0 : i32, i32, i32
  }
}

</mosaic_0001>

<bundles_post_ra>
// kernel: tpu_custom_call.1
= control target key start
LH: loop header
LB: loop body
LE: loop exit
PB: predicated region body
PF: predicated region fallthrough
CT: control target
= control target key end

     0   :  { %6 = vsyncpa [#allocation3], 0  ;;  %s1010_s0 = inlined_call_operand.hbm [shape: f32[8,4,1,8,128], index: 0, kind: input, shape index: {}]   ;;  %s1011_s1 = inlined_call_operand.hbm [shape: f32[1,8,128], index: 1, kind: output, shape index: {}]  }
   0x1   :  { %7 = vsyncpa [#allocation4], 0  ;;  %s770_s6 = smov [#allocation2]  }
   0x2   :  { %s13_s7 = sshll.u32 %s770_s6, 4  ;;  %s14_s7 = int_to_ptr.vmem [resolvable:$true] %s13_s7 }
   0x3   :  { %s734_s8 = scalar_lea.vmem %s14_s7, 4096  ;;  %p739_p1 = scmp.lt.s32.totalorder %s14_s7, %s14_s7 }
   0x4   :  { %p735_p0 = scmp.ne.s32.totalorder %s14_s7, %s734_s8  ;;  %p740_p2 = scmp.lt.s32.totalorder %s734_s8, %s734_s8 }
   0x6   :  { %p741_p3 = por %p740_p2, %p739_p1 }
   0x8   :  { %p742_p4 = pnand %p741_p3, %p735_p0 }
   0xa   :  { %745 = shalt.err (!%p742_p4)
}
   0xb   :  { %s771_s9 = smov 128   ;;  %s772_s10 = smov 8  }
   0xc   :  { %19 = dma.hbm_to_vmem [thread:$0]  %s1010_s0, 4096, %s14_s7, [#allocation3], %s771_s9, %s771_s9, %s772_s10  }
   0xd   :  { %766 = dma.done.wait [#allocation3], 4096  }
   0xe   :  { %767 = vsyncadd [#allocation3], 4294963200  ;;  %v23_v0 = vld [vmem:[#allocation2] sm:$0xff]  ;;  %v25_v1 = vld [vmem:[#allocation2 + $0x8] sm:$0xff]  ;;  %s773_s0 = smov [#allocation5]  }
   0xf   :  { %v26_v2 = vadd.f32 %v25_v1, %v23_v0  ;;  %v34_v3 = vld [vmem:[#allocation2 + $0x20] sm:$0xff]  ;;  %v28_v21 = vld [vmem:[#allocation2 + $0x10] sm:$0xff]  ;;  %v37_v26 = vld [vmem:[#allocation2 + $0x28] sm:$0xff]  ;;  %s545_s13 = sshll.u32 %s773_s0, 4  ;;  %s546_s13 = int_to_ptr.vmem [resolvable:$true] %s545_s13 }
  0x10   :  { %v35_v4 = vadd.f32 %v34_v3, %v23_v0  ;;  %v106_v27 = vld [vmem:[#allocation2 + $0x40] sm:$0xff]  ;;  %v31_v63 = vld [vmem:[#allocation2 + $0x18] sm:$0xff]  ;;  %s746_s14 = scalar_lea.vmem %s546_s13, 128  ;;  %p751_p6 = scmp.lt.s32.totalorder %s546_s13, %s546_s13 }
  0x11   :  { %v38_v5 = vmin.f32 %v23_v0, %v26_v2  ;;  %v787_v23 = vadd.f32 %v28_v21, %v26_v2  ;;  %p747_p5 = scmp.ne.s32.totalorder %s546_s13, %s746_s14  ;;  %p752_p7 = scmp.lt.s32.totalorder %s746_s14, %s746_s14 }
  0x12   :  { %v792_v31 = vadd.f32 %v106_v27, %v35_v4 }
  0x13   :  { %v39_v6 = vmin.f32 %v38_v5, %v35_v4  ;;  %v61_v29 = vmin.f32 %v26_v2, %v787_v23  ;;  %v32_v1 = vadd.f32 %v31_v63, %v787_v23  ;;  %v60_v5 = vld [vmem:[#allocation2 + $0x30] sm:$0xff]  ;;  %p753_p8 = por %p752_p7, %p751_p6 }
  0x15   :  { %v40_v7 = vsub.f32 %v39_v6, %v23_v0  ;;  %v44_v8 = vsub.f32 %v39_v6, %v26_v2  ;;  %v49_v9 = vsub.f32 %v39_v6, %v35_v4  ;;  %p754_p9 = pnand %p753_p8, %p747_p5 }
  0x17   :  { %v41_v10 = vmul.f32 10.0, %v40_v7  ;;  %v45_v11 = vmul.f32 10.0, %v44_v8  ;;  %v50_v12 = vmul.f32 10.0, %v49_v9  ;;  %v84_v8 = vmin.f32 %v787_v23, %v32_v1 }
  0x19   :  { %v42_v13 = vmul.f32 1.442695, %v41_v10  ;;  %v46_v14 = vmul.f32 1.442695, %v45_v11  ;;  %v51_v15 = vmul.f32 1.442695, %v50_v12 }
  0x1a   :  { %v109_v11 = vld [vmem:[#allocation2 + $0x48] sm:$0xff]  ;;  %v178_v12 = vld [vmem:[#allocation2 + $0x60] sm:$0xff] }
  0x1b   :  { %558 = vpow2.f32 %v42_v13 }
  0x1c   :  { %560 = vpow2.f32 %v46_v14 }
  0x1d   :  { %562 = vpow2.f32 %v51_v15 }
  0x28   :  { %v559_v16 = vpop.eup %558 }
  0x29   :  { %v561_v17 = vpop.eup %560 }
  0x2a   :  { %v563_v18 = vpop.eup %562  ;;  %v48_v19 = vadd.f32 %v561_v17, %v559_v16  ;;  %v813_v17 = vadd.f32 %v178_v12, %v792_v31 }
  0x2c   :  { %v53_v20 = vadd.f32 %v563_v18, %v48_v19 }
  0x2e   :  { %564 = vlog2.f32 %v53_v20 }
  0x3b   :  { %v565_v22 = vpop.eup %564 }
  0x3c   :  { %v55_v24 = vmul.f32 0.6931472, %v565_v22 }
  0x3e   :  { %v56_v25 = vmul.f32 0.1, %v55_v24 }
  0x40   :  { %v57_v28 = vsub.f32 %v39_v6, %v56_v25 }
  0x42   :  { %v790_v30 = vadd.f32 %v57_v28, %v37_v26 }
  0x44   :  { %v62_v32 = vmin.f32 %v61_v29, %v790_v30  ;;  %v110_v33 = vmin.f32 %v35_v4, %v790_v30 }
  0x46   :  { %v63_v34 = vsub.f32 %v62_v32, %v26_v2  ;;  %v67_v35 = vsub.f32 %v62_v32, %v787_v23  ;;  %v72_v36 = vsub.f32 %v62_v32, %v790_v30  ;;  %v111_v37 = vmin.f32 %v110_v33, %v792_v31 }
  0x48   :  { %v64_v38 = vmul.f32 10.0, %v63_v34  ;;  %v68_v39 = vmul.f32 10.0, %v67_v35  ;;  %v73_v40 = vmul.f32 10.0, %v72_v36  ;;  %v112_v41 = vsub.f32 %v111_v37, %v35_v4 }
  0x49   :  { %v116_v42 = vsub.f32 %v111_v37, %v790_v30  ;;  %v121_v43 = vsub.f32 %v111_v37, %v792_v31 }
  0x4a   :  { %v65_v44 = vmul.f32 1.442695, %v64_v38  ;;  %v69_v45 = vmul.f32 1.442695, %v68_v39  ;;  %v74_v46 = vmul.f32 1.442695, %v73_v40 }
  0x4b   :  { %v113_v47 = vmul.f32 10.0, %v112_v41  ;;  %v117_v48 = vmul.f32 10.0, %v116_v42  ;;  %v122_v49 = vmul.f32 10.0, %v121_v43 }
  0x4c   :  { %566 = vpow2.f32 %v65_v44 }
  0x4d   :  { %568 = vpow2.f32 %v69_v45  ;;  %v114_v50 = vmul.f32 1.442695, %v113_v47  ;;  %v118_v51 = vmul.f32 1.442695, %v117_v48  ;;  %v123_v52 = vmul.f32 1.442695, %v122_v49 }
  0x4e   :  { %570 = vpow2.f32 %v74_v46 }
  0x4f   :  { %572 = vpow2.f32 %v114_v50 }
  0x50   :  { %574 = vpow2.f32 %v118_v51 }
  0x51   :  { %576 = vpow2.f32 %v123_v52 }
  0x59   :  { %v567_v53 = vpop.eup %566 }
  0x5a   :  { %v569_v54 = vpop.eup %568 }
  0x5b   :  { %v571_v55 = vpop.eup %570  ;;  %v71_v56 = vadd.f32 %v569_v54, %v567_v53 }
  0x5c   :  { %v573_v57 = vpop.eup %572 }
  0x5d   :  { %v575_v58 = vpop.eup %574  ;;  %v76_v59 = vadd.f32 %v571_v55, %v71_v56 }
  0x5e   :  { %v577_v60 = vpop.eup %576  ;;  %v120_v61 = vadd.f32 %v575_v58, %v573_v57 }
  0x5f   :  { %578 = vlog2.f32 %v76_v59 }
  0x60   :  { %v125_v62 = vadd.f32 %v577_v60, %v120_v61 }
  0x62   :  { %580 = vlog2.f32 %v125_v62 }
  0x6c   :  { %v579_v0 = vpop.eup %578 }
  0x6d   :  { %v78_v2 = vmul.f32 0.6931472, %v579_v0 }
  0x6f   :  { %v581_v3 = vpop.eup %580  ;;  %v79_v4 = vmul.f32 0.1, %v78_v2 }
  0x70   :  { %v127_v6 = vmul.f32 0.6931472, %v581_v3  ;;  %v83_v3 = vld [vmem:[#allocation2 + $0x38] sm:$0xff] }
  0x71   :  { %v80_v7 = vsub.f32 %v62_v32, %v79_v4 }
  0x72   :  { %v128_v9 = vmul.f32 0.1, %v127_v6 }
  0x73   :  { %v803_v10 = vadd.f32 %v80_v7, %v60_v5 }
  0x74   :  { %v129_v13 = vsub.f32 %v111_v37, %v128_v9  ;;  %v132_v9 = vld [vmem:[#allocation2 + $0x50] sm:$0xff] }
  0x75   :  { %v806_v14 = vmin.f32 %v84_v8, %v803_v10  ;;  %v133_v15 = vmin.f32 %v790_v30, %v803_v10 }
  0x76   :  { %v810_v16 = vadd.f32 %v129_v13, %v109_v11 }
  0x77   :  { %v86_v18 = vsub.f32 %v806_v14, %v787_v23  ;;  %v90_v19 = vsub.f32 %v806_v14, %v32_v1  ;;  %v95_v20 = vsub.f32 %v806_v14, %v803_v10 }
  0x78   :  { %v821_v21 = vmin.f32 %v133_v15, %v810_v16  ;;  %v182_v22 = vmin.f32 %v792_v31, %v810_v16 }
  0x79   :  { %v87_v24 = vmul.f32 10.0, %v86_v18  ;;  %v91_v25 = vmul.f32 10.0, %v90_v19  ;;  %v96_v26 = vmul.f32 10.0, %v95_v20  ;;  %v181_v19 = vld [vmem:[#allocation2 + $0x68] sm:$0xff]  ;;  %v250_v20 = vld [vmem:[#allocation2 + $0x80] sm:$0xff] }
  0x7a   :  { %v135_v27 = vsub.f32 %v821_v21, %v790_v30  ;;  %v139_v23 = vsub.f32 %v821_v21, %v803_v10  ;;  %v144_v28 = vsub.f32 %v821_v21, %v810_v16  ;;  %v832_v29 = vmin.f32 %v182_v22, %v813_v17 }
  0x7b   :  { %v88_v32 = vmul.f32 1.442695, %v87_v24  ;;  %v92_v33 = vmul.f32 1.442695, %v91_v25  ;;  %v97_v34 = vmul.f32 1.442695, %v96_v26  ;;  %v854_v26 = vadd.f32 %v250_v20, %v813_v17 }
  0x7c   :  { %v136_v35 = vmul.f32 10.0, %v135_v27  ;;  %v140_v36 = vmul.f32 10.0, %v139_v23  ;;  %v145_v37 = vmul.f32 10.0, %v144_v28  ;;  %v184_v38 = vsub.f32 %v832_v29, %v792_v31 }
  0x7d   :  { %582 = vpow2.f32 %v88_v32  ;;  %v188_v30 = vsub.f32 %v832_v29, %v810_v16  ;;  %v193_v39 = vsub.f32 %v832_v29, %v813_v17 }
  0x7e   :  { %584 = vpow2.f32 %v92_v33  ;;  %v137_v40 = vmul.f32 1.442695, %v136_v35  ;;  %v141_v41 = vmul.f32 1.442695, %v140_v36  ;;  %v146_v42 = vmul.f32 1.442695, %v145_v37 }
  0x7f   :  { %586 = vpow2.f32 %v97_v34  ;;  %v185_v43 = vmul.f32 10.0, %v184_v38  ;;  %v189_v44 = vmul.f32 10.0, %v188_v30  ;;  %v194_v45 = vmul.f32 10.0, %v193_v39 }
  0x80   :  { %588 = vpow2.f32 %v137_v40 }
  0x81   :  { %590 = vpow2.f32 %v141_v41  ;;  %v186_v46 = vmul.f32 1.442695, %v185_v43  ;;  %v190_v47 = vmul.f32 1.442695, %v189_v44  ;;  %v195_v31 = vmul.f32 1.442695, %v194_v45 }
  0x82   :  { %592 = vpow2.f32 %v146_v42 }
  0x83   :  { %594 = vpow2.f32 %v186_v46 }
  0x84   :  { %596 = vpow2.f32 %v190_v47 }
  0x85   :  { %598 = vpow2.f32 %v195_v31 }
  0x8a   :  { %v583_v48 = vpop.eup %582 }
  0x8b   :  { %v585_v49 = vpop.eup %584 }
  0x8c   :  { %v587_v50 = vpop.eup %586  ;;  %v94_v51 = vadd.f32 %v585_v49, %v583_v48 }
  0x8d   :  { %v589_v52 = vpop.eup %588 }
  0x8e   :  { %v591_v53 = vpop.eup %590  ;;  %v99_v54 = vadd.f32 %v587_v50, %v94_v51 }
  0x8f   :  { %v593_v55 = vpop.eup %592  ;;  %v143_v56 = vadd.f32 %v591_v53, %v589_v52 }
  0x90   :  { %v595_v57 = vpop.eup %594  ;;  %600 = vlog2.f32 %v99_v54 }
  0x91   :  { %v597_v58 = vpop.eup %596  ;;  %v148_v59 = vadd.f32 %v593_v55, %v143_v56 }
  0x92   :  { %v599_v60 = vpop.eup %598  ;;  %v192_v61 = vadd.f32 %v597_v58, %v595_v57 }
  0x93   :  { %602 = vlog2.f32 %v148_v59 }
  0x94   :  { %v197_v62 = vadd.f32 %v599_v60, %v192_v61 }
  0x96   :  { %604 = vlog2.f32 %v197_v62 }
  0x9d   :  { %v601_v63 = vpop.eup %600 }
  0x9e   :  { %v101_v0 = vmul.f32 0.6931472, %v601_v63 }
  0xa0   :  { %v603_v1 = vpop.eup %602  ;;  %v102_v2 = vmul.f32 0.1, %v101_v0 }
  0xa1   :  { %v150_v4 = vmul.f32 0.6931472, %v603_v1 }
  0xa2   :  { %v103_v5 = vsub.f32 %v806_v14, %v102_v2 }
  0xa3   :  { %v605_v6 = vpop.eup %604  ;;  %v151_v7 = vmul.f32 0.1, %v150_v4 }
  0xa4   :  { %v104_v8 = vadd.f32 %v103_v5, %v83_v3  ;;  %v199_v11 = vmul.f32 0.6931472, %v605_v6 }
  0xa5   :  { %v152_v12 = vsub.f32 %v821_v21, %v151_v7  ;;  %v155_v7 = vld [vmem:[#allocation2 + $0x58] sm:$0xff] }
  0xa6   :  { %v156_v13 = vmin.f32 %v803_v10, %v104_v8  ;;  %v200_v15 = vmul.f32 0.1, %v199_v11 }
  0xa7   :  { %v843_v18 = vadd.f32 %v152_v12, %v132_v9 }
  0xa8   :  { %v201_v22 = vsub.f32 %v832_v29, %v200_v15  ;;  %v204_v15 = vld [vmem:[#allocation2 + $0x70] sm:$0xff] }
  0xa9   :  { %v847_v24 = vmin.f32 %v156_v13, %v843_v18  ;;  %v205_v14 = vmin.f32 %v810_v16, %v843_v18 }
  0xaa   :  { %v851_v25 = vadd.f32 %v201_v22, %v181_v19 }
  0xab   :  { %v158_v21 = vsub.f32 %v847_v24, %v803_v10  ;;  %v162_v27 = vsub.f32 %v847_v24, %v104_v8  ;;  %v167_v23 = vsub.f32 %v847_v24, %v843_v18 }
  0xac   :  { %v862_v28 = vmin.f32 %v205_v14, %v851_v25  ;;  %v254_v29 = vmin.f32 %v813_v17, %v851_v25 }
  0xad   :  { %v159_v32 = vmul.f32 10.0, %v158_v21  ;;  %v163_v33 = vmul.f32 10.0, %v162_v27  ;;  %v168_v34 = vmul.f32 10.0, %v167_v23  ;;  %v253_v27 = vld [vmem:[#allocation2 + $0x88] sm:$0xff]  ;;  %v322_v23 = vld [vmem:[#allocation2 + $0xa0] sm:$0xff] }
  0xae   :  { %v207_v35 = vsub.f32 %v862_v28, %v810_v16  ;;  %v211_v10 = vsub.f32 %v862_v28, %v843_v18  ;;  %v216_v36 = vsub.f32 %v862_v28, %v851_v25  ;;  %v873_v37 = vmin.f32 %v254_v29, %v854_v26 }
  0xaf   :  { %v160_v38 = vmul.f32 1.442695, %v159_v32  ;;  %v164_v30 = vmul.f32 1.442695, %v163_v33  ;;  %v169_v39 = vmul.f32 1.442695, %v168_v34  ;;  %v895_v34 = vadd.f32 %v322_v23, %v854_v26 }
  0xb0   :  { %v208_v40 = vmul.f32 10.0, %v207_v35  ;;  %v212_v41 = vmul.f32 10.0, %v211_v10  ;;  %v217_v42 = vmul.f32 10.0, %v216_v36  ;;  %v256_v43 = vsub.f32 %v873_v37, %v813_v17 }
  0xb1   :  { %606 = vpow2.f32 %v160_v38  ;;  %v260_v16 = vsub.f32 %v873_v37, %v851_v25  ;;  %v265_v44 = vsub.f32 %v873_v37, %v854_v26 }
  0xb2   :  { %608 = vpow2.f32 %v164_v30  ;;  %v209_v45 = vmul.f32 1.442695, %v208_v40  ;;  %v213_v46 = vmul.f32 1.442695, %v212_v41  ;;  %v218_v47 = vmul.f32 1.442695, %v217_v42 }
  0xb3   :  { %610 = vpow2.f32 %v169_v39  ;;  %v257_v31 = vmul.f32 10.0, %v256_v43  ;;  %v261_v48 = vmul.f32 10.0, %v260_v16  ;;  %v266_v49 = vmul.f32 10.0, %v265_v44 }
  0xb4   :  { %612 = vpow2.f32 %v209_v45 }
  0xb5   :  { %614 = vpow2.f32 %v213_v46  ;;  %v258_v50 = vmul.f32 1.442695, %v257_v31  ;;  %v262_v51 = vmul.f32 1.442695, %v261_v48  ;;  %v267_v17 = vmul.f32 1.442695, %v266_v49 }
  0xb6   :  { %616 = vpow2.f32 %v218_v47 }
  0xb7   :  { %618 = vpow2.f32 %v258_v50 }
  0xb8   :  { %620 = vpow2.f32 %v262_v51 }
  0xb9   :  { %622 = vpow2.f32 %v267_v17 }
  0xbe   :  { %v607_v52 = vpop.eup %606 }
  0xbf   :  { %v609_v53 = vpop.eup %608 }
  0xc0   :  { %v611_v54 = vpop.eup %610  ;;  %v166_v55 = vadd.f32 %v609_v53, %v607_v52 }
  0xc1   :  { %v613_v56 = vpop.eup %612 }
  0xc2   :  { %v615_v57 = vpop.eup %614  ;;  %v171_v58 = vadd.f32 %v611_v54, %v166_v55 }
  0xc3   :  { %v617_v59 = vpop.eup %616  ;;  %v215_v60 = vadd.f32 %v615_v57, %v613_v56 }
  0xc4   :  { %v619_v61 = vpop.eup %618  ;;  %624 = vlog2.f32 %v171_v58 }
  0xc5   :  { %v621_v62 = vpop.eup %620  ;;  %v220_v63 = vadd.f32 %v617_v59, %v215_v60 }
  0xc6   :  { %v623_v0 = vpop.eup %622  ;;  %v264_v1 = vadd.f32 %v621_v62, %v619_v61 }
  0xc7   :  { %626 = vlog2.f32 %v220_v63 }
  0xc8   :  { %v269_v2 = vadd.f32 %v623_v0, %v264_v1 }
  0xca   :  { %628 = vlog2.f32 %v269_v2 }
  0xd1   :  { %v625_v3 = vpop.eup %624 }
  0xd2   :  { %v173_v4 = vmul.f32 0.6931472, %v625_v3 }
  0xd4   :  { %v627_v5 = vpop.eup %626  ;;  %v174_v6 = vmul.f32 0.1, %v173_v4 }
  0xd5   :  { %v222_v8 = vmul.f32 0.6931472, %v627_v5 }
  0xd6   :  { %v175_v9 = vsub.f32 %v847_v24, %v174_v6 }
  0xd7   :  { %v629_v11 = vpop.eup %628  ;;  %v223_v12 = vmul.f32 0.1, %v222_v8 }
  0xd8   :  { %v176_v13 = vadd.f32 %v175_v9, %v155_v7  ;;  %v271_v19 = vmul.f32 0.6931472, %v629_v11 }
  0xd9   :  { %v224_v20 = vsub.f32 %v862_v28, %v223_v12  ;;  %v227_v12 = vld [vmem:[#allocation2 + $0x78] sm:$0xff] }
  0xda   :  { %v228_v22 = vmin.f32 %v843_v18, %v176_v13  ;;  %v272_v14 = vmul.f32 0.1, %v271_v19 }
  0xdb   :  { %v884_v21 = vadd.f32 %v224_v20, %v204_v15 }
  0xdc   :  { %v273_v29 = vsub.f32 %v873_v37, %v272_v14  ;;  %v276_v14 = vld [vmem:[#allocation2 + $0x90] sm:$0xff] }
  0xdd   :  { %v888_v32 = vmin.f32 %v228_v22, %v884_v21  ;;  %v277_v24 = vmin.f32 %v851_v25, %v884_v21 }
  0xde   :  { %v892_v33 = vadd.f32 %v273_v29, %v253_v27 }
  0xdf   :  { %v230_v28 = vsub.f32 %v888_v32, %v843_v18  ;;  %v234_v35 = vsub.f32 %v888_v32, %v176_v13  ;;  %v239_v10 = vsub.f32 %v888_v32, %v884_v21 }
  0xe0   :  { %v903_v36 = vmin.f32 %v277_v24, %v892_v33  ;;  %v326_v37 = vmin.f32 %v854_v26, %v892_v33 }
  0xe1   :  { %v231_v38 = vmul.f32 10.0, %v230_v28  ;;  %v235_v30 = vmul.f32 10.0, %v234_v35  ;;  %v240_v39 = vmul.f32 10.0, %v239_v10  ;;  %v325_v35 = vld [vmem:[#allocation2 + $0xa8] sm:$0xff]  ;;  %v394_v10 = vld [vmem:[#allocation2 + $0xc0] sm:$0xff] }
  0xe2   :  { %v279_v40 = vsub.f32 %v903_v36, %v851_v25  ;;  %v283_v18 = vsub.f32 %v903_v36, %v884_v21  ;;  %v288_v41 = vsub.f32 %v903_v36, %v892_v33  ;;  %v914_v42 = vmin.f32 %v326_v37, %v895_v34 }
  0xe3   :  { %v232_v43 = vmul.f32 1.442695, %v231_v38  ;;  %v236_v16 = vmul.f32 1.442695, %v235_v30  ;;  %v241_v44 = vmul.f32 1.442695, %v240_v39  ;;  %v936_v39 = vadd.f32 %v394_v10, %v895_v34 }
  0xe4   :  { %v280_v45 = vmul.f32 10.0, %v279_v40  ;;  %v284_v46 = vmul.f32 10.0, %v283_v18  ;;  %v289_v47 = vmul.f32 10.0, %v288_v41  ;;  %v328_v31 = vsub.f32 %v914_v42, %v854_v26 }
  0xe5   :  { %630 = vpow2.f32 %v232_v43  ;;  %v332_v25 = vsub.f32 %v914_v42, %v892_v33  ;;  %v337_v48 = vsub.f32 %v914_v42, %v895_v34 }
  0xe6   :  { %632 = vpow2.f32 %v236_v16  ;;  %v281_v49 = vmul.f32 1.442695, %v280_v45  ;;  %v285_v50 = vmul.f32 1.442695, %v284_v46  ;;  %v290_v51 = vmul.f32 1.442695, %v289_v47 }
  0xe7   :  { %634 = vpow2.f32 %v241_v44  ;;  %v329_v17 = vmul.f32 10.0, %v328_v31  ;;  %v333_v52 = vmul.f32 10.0, %v332_v25  ;;  %v338_v53 = vmul.f32 10.0, %v337_v48 }
  0xe8   :  { %636 = vpow2.f32 %v281_v49 }
  0xe9   :  { %638 = vpow2.f32 %v285_v50  ;;  %v330_v54 = vmul.f32 1.442695, %v329_v17  ;;  %v334_v55 = vmul.f32 1.442695, %v333_v52  ;;  %v339_v26 = vmul.f32 1.442695, %v338_v53 }
  0xea   :  { %640 = vpow2.f32 %v290_v51 }
  0xeb   :  { %642 = vpow2.f32 %v330_v54 }
  0xec   :  { %644 = vpow2.f32 %v334_v55 }
  0xed   :  { %646 = vpow2.f32 %v339_v26 }
  0xf2   :  { %v631_v56 = vpop.eup %630 }
  0xf3   :  { %v633_v57 = vpop.eup %632 }
  0xf4   :  { %v635_v58 = vpop.eup %634  ;;  %v238_v59 = vadd.f32 %v633_v57, %v631_v56 }
  0xf5   :  { %v637_v60 = vpop.eup %636 }
  0xf6   :  { %v639_v61 = vpop.eup %638  ;;  %v243_v62 = vadd.f32 %v635_v58, %v238_v59 }
  0xf7   :  { %v641_v63 = vpop.eup %640  ;;  %v287_v0 = vadd.f32 %v639_v61, %v637_v60 }
  0xf8   :  { %v643_v1 = vpop.eup %642  ;;  %648 = vlog2.f32 %v243_v62 }
  0xf9   :  { %v645_v2 = vpop.eup %644  ;;  %v292_v3 = vadd.f32 %v641_v63, %v287_v0 }
  0xfa   :  { %v647_v4 = vpop.eup %646  ;;  %v336_v5 = vadd.f32 %v645_v2, %v643_v1 }
  0xfb   :  { %650 = vlog2.f32 %v292_v3 }
  0xfc   :  { %v341_v6 = vadd.f32 %v647_v4, %v336_v5 }
  0xfe   :  { %652 = vlog2.f32 %v341_v6 }
 0x105   :  { %v649_v7 = vpop.eup %648 }
 0x106   :  { %v245_v8 = vmul.f32 0.6931472, %v649_v7 }
 0x108   :  { %v651_v9 = vpop.eup %650  ;;  %v246_v11 = vmul.f32 0.1, %v245_v8 }
 0x109   :  { %v294_v13 = vmul.f32 0.6931472, %v651_v9 }
 0x10a   :  { %v247_v15 = vsub.f32 %v888_v32, %v246_v11 }
 0x10b   :  { %v653_v19 = vpop.eup %652  ;;  %v295_v20 = vmul.f32 0.1, %v294_v13 }
 0x10c   :  { %v248_v22 = vadd.f32 %v247_v15, %v227_v12  ;;  %v343_v27 = vmul.f32 0.6931472, %v653_v19 }
 0x10d   :  { %v296_v23 = vsub.f32 %v903_v36, %v295_v20  ;;  %v299_v20 = vld [vmem:[#allocation2 + $0x98] sm:$0xff] }
 0x10e   :  { %v300_v29 = vmin.f32 %v884_v21, %v248_v22  ;;  %v344_v24 = vmul.f32 0.1, %v343_v27 }
 0x10f   :  { %v925_v28 = vadd.f32 %v296_v23, %v276_v14 }
 0x110   :  { %v345_v37 = vsub.f32 %v914_v42, %v344_v24  ;;  %v348_v24 = vld [vmem:[#allocation2 + $0xb0] sm:$0xff] }
 0x111   :  { %v929_v38 = vmin.f32 %v300_v29, %v925_v28  ;;  %v349_v32 = vmin.f32 %v892_v33, %v925_v28 }
 0x112   :  { %v933_v30 = vadd.f32 %v345_v37, %v325_v35 }
 0x113   :  { %v302_v36 = vsub.f32 %v929_v38, %v884_v21  ;;  %v306_v40 = vsub.f32 %v929_v38, %v248_v22  ;;  %v311_v18 = vsub.f32 %v929_v38, %v925_v28 }
 0x114   :  { %v944_v41 = vmin.f32 %v349_v32, %v933_v30  ;;  %v398_v42 = vmin.f32 %v895_v34, %v933_v30 }
 0x115   :  { %v303_v43 = vmul.f32 10.0, %v302_v36  ;;  %v307_v16 = vmul.f32 10.0, %v306_v40  ;;  %v312_v44 = vmul.f32 10.0, %v311_v18  ;;  %v397_v40 = vld [vmem:[#allocation2 + $0xc8] sm:$0xff]  ;;  %v466_v18 = vld [vmem:[#allocation2 + $0xe0] sm:$0xff] }
 0x116   :  { %v351_v45 = vsub.f32 %v944_v41, %v892_v33  ;;  %v355_v21 = vsub.f32 %v944_v41, %v925_v28  ;;  %v360_v46 = vsub.f32 %v944_v41, %v933_v30  ;;  %v955_v47 = vmin.f32 %v398_v42, %v936_v39 }
 0x117   :  { %v304_v31 = vmul.f32 1.442695, %v303_v43  ;;  %v308_v25 = vmul.f32 1.442695, %v307_v16  ;;  %v313_v48 = vmul.f32 1.442695, %v312_v44  ;;  %v467_v44 = vadd.f32 %v466_v18, %v936_v39 }
 0x118   :  { %v352_v49 = vmul.f32 10.0, %v351_v45  ;;  %v356_v50 = vmul.f32 10.0, %v355_v21  ;;  %v361_v51 = vmul.f32 10.0, %v360_v46  ;;  %v400_v17 = vsub.f32 %v955_v47, %v895_v34 }
 0x119   :  { %654 = vpow2.f32 %v304_v31  ;;  %v404_v33 = vsub.f32 %v955_v47, %v933_v30  ;;  %v409_v52 = vsub.f32 %v955_v47, %v936_v39 }
 0x11a   :  { %656 = vpow2.f32 %v308_v25  ;;  %v353_v53 = vmul.f32 1.442695, %v352_v49  ;;  %v357_v54 = vmul.f32 1.442695, %v356_v50  ;;  %v362_v55 = vmul.f32 1.442695, %v361_v51 }
 0x11b   :  { %658 = vpow2.f32 %v313_v48  ;;  %v401_v26 = vmul.f32 10.0, %v400_v17  ;;  %v405_v56 = vmul.f32 10.0, %v404_v33  ;;  %v410_v57 = vmul.f32 10.0, %v409_v52 }
 0x11c   :  { %660 = vpow2.f32 %v353_v53 }
 0x11d   :  { %662 = vpow2.f32 %v357_v54  ;;  %v402_v58 = vmul.f32 1.442695, %v401_v26  ;;  %v406_v59 = vmul.f32 1.442695, %v405_v56  ;;  %v411_v34 = vmul.f32 1.442695, %v410_v57 }
 0x11e   :  { %664 = vpow2.f32 %v362_v55 }
 0x11f   :  { %666 = vpow2.f32 %v402_v58 }
 0x120   :  { %668 = vpow2.f32 %v406_v59 }
 0x121   :  { %670 = vpow2.f32 %v411_v34 }
 0x126   :  { %v655_v60 = vpop.eup %654 }
 0x127   :  { %v657_v61 = vpop.eup %656 }
 0x128   :  { %v659_v62 = vpop.eup %658  ;;  %v310_v63 = vadd.f32 %v657_v61, %v655_v60 }
 0x129   :  { %v661_v0 = vpop.eup %660 }
 0x12a   :  { %v663_v1 = vpop.eup %662  ;;  %v315_v2 = vadd.f32 %v659_v62, %v310_v63 }
 0x12b   :  { %v665_v3 = vpop.eup %664  ;;  %v359_v4 = vadd.f32 %v663_v1, %v661_v0 }
 0x12c   :  { %v667_v5 = vpop.eup %666  ;;  %672 = vlog2.f32 %v315_v2 }
 0x12d   :  { %v669_v6 = vpop.eup %668  ;;  %v364_v7 = vadd.f32 %v665_v3, %v359_v4 }
 0x12e   :  { %v671_v8 = vpop.eup %670  ;;  %v408_v9 = vadd.f32 %v669_v6, %v667_v5 }
 0x12f   :  { %674 = vlog2.f32 %v364_v7 }
 0x130   :  { %v413_v11 = vadd.f32 %v671_v8, %v408_v9 }
 0x132   :  { %676 = vlog2.f32 %v413_v11 }
 0x139   :  { %v673_v12 = vpop.eup %672 }
 0x13a   :  { %v317_v13 = vmul.f32 0.6931472, %v673_v12 }
 0x13c   :  { %v675_v15 = vpop.eup %674  ;;  %v318_v19 = vmul.f32 0.1, %v317_v13 }
 0x13d   :  { %v366_v22 = vmul.f32 0.6931472, %v675_v15 }
 0x13e   :  { %v319_v14 = vsub.f32 %v929_v38, %v318_v19 }
 0x13f   :  { %v677_v27 = vpop.eup %676  ;;  %v367_v23 = vmul.f32 0.1, %v366_v22 }
 0x140   :  { %v320_v29 = vadd.f32 %v319_v14, %v299_v20  ;;  %v415_v35 = vmul.f32 0.6931472, %v677_v27 }
 0x141   :  { %v368_v10 = vsub.f32 %v944_v41, %v367_v23  ;;  %v371_v23 = vld [vmem:[#allocation2 + $0xb8] sm:$0xff] }
 0x142   :  { %v372_v37 = vmin.f32 %v925_v28, %v320_v29  ;;  %v416_v32 = vmul.f32 0.1, %v415_v35 }
 0x143   :  { %v966_v36 = vadd.f32 %v368_v10, %v348_v24 }
 0x144   :  { %v417_v42 = vsub.f32 %v955_v47, %v416_v32  ;;  %v420_v32 = vld [vmem:[#allocation2 + $0xd0] sm:$0xff] }
 0x145   :  { %v970_v43 = vmin.f32 %v372_v37, %v966_v36  ;;  %v421_v38 = vmin.f32 %v933_v30, %v966_v36 }
 0x146   :  { %v974_v16 = vadd.f32 %v417_v42, %v397_v40 }
 0x147   :  { %v374_v41 = vsub.f32 %v970_v43, %v925_v28  ;;  %v378_v45 = vsub.f32 %v970_v43, %v320_v29  ;;  %v383_v21 = vsub.f32 %v970_v43, %v966_v36 }
 0x148   :  { %v983_v46 = vmin.f32 %v421_v38, %v974_v16  ;;  %v470_v47 = vmin.f32 %v936_v39, %v974_v16 }
 0x149   :  { %v375_v31 = vmul.f32 10.0, %v374_v41  ;;  %v379_v25 = vmul.f32 10.0, %v378_v45  ;;  %v384_v48 = vmul.f32 10.0, %v383_v21  ;;  %v469_v41 = vld [vmem:[#allocation2 + $0xe8] sm:$0xff] }
 0x14a   :  { %v423_v49 = vsub.f32 %v983_v46, %v933_v30  ;;  %v427_v28 = vsub.f32 %v983_v46, %v966_v36  ;;  %v432_v50 = vsub.f32 %v983_v46, %v974_v16  ;;  %v993_v51 = vmin.f32 %v470_v47, %v467_v44 }
 0x14b   :  { %v376_v17 = vmul.f32 1.442695, %v375_v31  ;;  %v380_v33 = vmul.f32 1.442695, %v379_v25  ;;  %v385_v52 = vmul.f32 1.442695, %v384_v48 }
 0x14c   :  { %v424_v53 = vmul.f32 10.0, %v423_v49  ;;  %v428_v54 = vmul.f32 10.0, %v427_v28  ;;  %v433_v55 = vmul.f32 10.0, %v432_v50  ;;  %v472_v26 = vsub.f32 %v993_v51, %v936_v39 }
 0x14d   :  { %678 = vpow2.f32 %v376_v17  ;;  %v476_v30 = vsub.f32 %v993_v51, %v974_v16  ;;  %v481_v56 = vsub.f32 %v993_v51, %v467_v44 }
 0x14e   :  { %680 = vpow2.f32 %v380_v33  ;;  %v425_v57 = vmul.f32 1.442695, %v424_v53  ;;  %v429_v58 = vmul.f32 1.442695, %v428_v54  ;;  %v434_v59 = vmul.f32 1.442695, %v433_v55 }
 0x14f   :  { %682 = vpow2.f32 %v385_v52  ;;  %v473_v34 = vmul.f32 10.0, %v472_v26  ;;  %v477_v60 = vmul.f32 10.0, %v476_v30  ;;  %v482_v61 = vmul.f32 10.0, %v481_v56 }
 0x150   :  { %684 = vpow2.f32 %v425_v57 }
 0x151   :  { %686 = vpow2.f32 %v429_v58  ;;  %v474_v62 = vmul.f32 1.442695, %v473_v34  ;;  %v478_v63 = vmul.f32 1.442695, %v477_v60  ;;  %v483_v0 = vmul.f32 1.442695, %v482_v61 }
 0x152   :  { %688 = vpow2.f32 %v434_v59 }
 0x153   :  { %690 = vpow2.f32 %v474_v62 }
 0x154   :  { %692 = vpow2.f32 %v478_v63 }
 0x155   :  { %694 = vpow2.f32 %v483_v0 }
 0x15a   :  { %v679_v39 = vpop.eup %678 }
 0x15b   :  { %v681_v1 = vpop.eup %680 }
 0x15c   :  { %v683_v2 = vpop.eup %682  ;;  %v382_v3 = vadd.f32 %v681_v1, %v679_v39 }
 0x15d   :  { %v685_v4 = vpop.eup %684 }
 0x15e   :  { %v687_v5 = vpop.eup %686  ;;  %v387_v6 = vadd.f32 %v683_v2, %v382_v3 }
 0x15f   :  { %v689_v7 = vpop.eup %688  ;;  %v431_v8 = vadd.f32 %v687_v5, %v685_v4  ;;  %v443_v5 = vld [vmem:[#allocation2 + $0xd8] sm:$0xff] }
 0x160   :  { %v691_v9 = vpop.eup %690  ;;  %696 = vlog2.f32 %v387_v6 }
 0x161   :  { %v693_v11 = vpop.eup %692  ;;  %v436_v12 = vadd.f32 %v689_v7, %v431_v8 }
 0x162   :  { %v695_v13 = vpop.eup %694  ;;  %v480_v15 = vadd.f32 %v693_v11, %v691_v9  ;;  %v492_v11 = vld [vmem:[#allocation2 + $0xf0] sm:$0xff] }
 0x163   :  { %698 = vlog2.f32 %v436_v12 }
 0x164   :  { %v485_v19 = vadd.f32 %v695_v13, %v480_v15 }
 0x166   :  { %700 = vlog2.f32 %v485_v19 }
 0x16d   :  { %v697_v20 = vpop.eup %696 }
 0x16e   :  { %v389_v22 = vmul.f32 0.6931472, %v697_v20 }
 0x170   :  { %v699_v14 = vpop.eup %698  ;;  %v390_v27 = vmul.f32 0.1, %v389_v22 }
 0x171   :  { %v438_v29 = vmul.f32 0.6931472, %v699_v14 }
 0x172   :  { %v391_v24 = vsub.f32 %v970_v43, %v390_v27 }
 0x173   :  { %v701_v35 = vpop.eup %700  ;;  %v439_v10 = vmul.f32 0.1, %v438_v29 }
 0x174   :  { %v392_v37 = vadd.f32 %v391_v24, %v371_v23  ;;  %v487_v40 = vmul.f32 0.6931472, %v701_v35 }
 0x175   :  { %v440_v18 = vsub.f32 %v983_v46, %v439_v10 }
 0x176   :  { %v444_v42 = vmin.f32 %v966_v36, %v392_v37  ;;  %v488_v38 = vmul.f32 0.1, %v487_v40 }
 0x177   :  { %v441_v44 = vadd.f32 %v440_v18, %v420_v32 }
 0x178   :  { %v489_v45 = vsub.f32 %v993_v51, %v488_v38 }
 0x179   :  { %v445_v21 = vmin.f32 %v444_v42, %v441_v44  ;;  %v493_v47 = vmin.f32 %v974_v16, %v441_v44 }
 0x17a   :  { %v490_v31 = vadd.f32 %v489_v45, %v469_v41  ;;  %v515_v45 = vld [vmem:[#allocation2 + $0xf8] sm:$0xff] }
 0x17b   :  { %v446_v43 = vsub.f32 %v445_v21, %v966_v36  ;;  %v450_v25 = vsub.f32 %v445_v21, %v392_v37  ;;  %v455_v48 = vsub.f32 %v445_v21, %v441_v44 }
 0x17c   :  { %v494_v49 = vmin.f32 %v493_v47, %v490_v31 }
 0x17d   :  { %v447_v28 = vmul.f32 10.0, %v446_v43  ;;  %v451_v50 = vmul.f32 10.0, %v450_v25  ;;  %v456_v17 = vmul.f32 10.0, %v455_v48 }
 0x17e   :  { %v495_v46 = vsub.f32 %v494_v49, %v974_v16  ;;  %v499_v33 = vsub.f32 %v494_v49, %v441_v44  ;;  %v504_v52 = vsub.f32 %v494_v49, %v490_v31 }
 0x17f   :  { %v448_v53 = vmul.f32 1.442695, %v447_v28  ;;  %v452_v54 = vmul.f32 1.442695, %v451_v50  ;;  %v457_v55 = vmul.f32 1.442695, %v456_v17 }
 0x180   :  { %v496_v51 = vmul.f32 10.0, %v495_v46  ;;  %v500_v26 = vmul.f32 10.0, %v499_v33  ;;  %v505_v30 = vmul.f32 10.0, %v504_v52 }
 0x181   :  { %702 = vpow2.f32 %v448_v53 }
 0x182   :  { %704 = vpow2.f32 %v452_v54  ;;  %v497_v56 = vmul.f32 1.442695, %v496_v51  ;;  %v501_v36 = vmul.f32 1.442695, %v500_v26  ;;  %v506_v57 = vmul.f32 1.442695, %v505_v30 }
 0x183   :  { %706 = vpow2.f32 %v457_v55 }
 0x184   :  { %708 = vpow2.f32 %v497_v56 }
 0x185   :  { %710 = vpow2.f32 %v501_v36 }
 0x186   :  { %712 = vpow2.f32 %v506_v57 }
 0x18e   :  { %v703_v58 = vpop.eup %702 }
 0x18f   :  { %v705_v59 = vpop.eup %704 }
 0x190   :  { %v707_v16 = vpop.eup %706  ;;  %v454_v34 = vadd.f32 %v705_v59, %v703_v58 }
 0x191   :  { %v709_v60 = vpop.eup %708 }
 0x192   :  { %v711_v61 = vpop.eup %710  ;;  %v459_v62 = vadd.f32 %v707_v16, %v454_v34 }
 0x193   :  { %v713_v63 = vpop.eup %712  ;;  %v503_v0 = vadd.f32 %v711_v61, %v709_v60 }
 0x194   :  { %714 = vlog2.f32 %v459_v62 }
 0x195   :  { %v508_v39 = vadd.f32 %v713_v63, %v503_v0 }
 0x197   :  { %716 = vlog2.f32 %v508_v39 }
 0x1a1   :  { %v715_v1 = vpop.eup %714 }
 0x1a2   :  { %v461_v2 = vmul.f32 0.6931472, %v715_v1 }
 0x1a4   :  { %v717_v3 = vpop.eup %716  ;;  %v462_v4 = vmul.f32 0.1, %v461_v2 }
 0x1a5   :  { %v510_v6 = vmul.f32 0.6931472, %v717_v3 }
 0x1a6   :  { %v463_v7 = vsub.f32 %v445_v21, %v462_v4 }
 0x1a7   :  { %v511_v8 = vmul.f32 0.1, %v510_v6 }
 0x1a8   :  { %v464_v9 = vadd.f32 %v463_v7, %v443_v5 }
 0x1a9   :  { %v512_v12 = vsub.f32 %v494_v49, %v511_v8 }
 0x1aa   :  { %v516_v13 = vmin.f32 %v441_v44, %v464_v9 }
 0x1ab   :  { %v513_v15 = vadd.f32 %v512_v12, %v492_v11 }
 0x1ad   :  { %v517_v19 = vmin.f32 %v516_v13, %v513_v15 }
 0x1af   :  { %v518_v20 = vsub.f32 %v517_v19, %v441_v44  ;;  %v522_v22 = vsub.f32 %v517_v19, %v464_v9  ;;  %v527_v14 = vsub.f32 %v517_v19, %v513_v15 }
 0x1b1   :  { %v519_v27 = vmul.f32 10.0, %v518_v20  ;;  %v523_v23 = vmul.f32 10.0, %v522_v22  ;;  %v528_v29 = vmul.f32 10.0, %v527_v14 }
 0x1b3   :  { %v520_v24 = vmul.f32 1.442695, %v519_v27  ;;  %v524_v35 = vmul.f32 1.442695, %v523_v23  ;;  %v529_v10 = vmul.f32 1.442695, %v528_v29 }
 0x1b5   :  { %718 = vpow2.f32 %v520_v24 }
 0x1b6   :  { %720 = vpow2.f32 %v524_v35 }
 0x1b7   :  { %722 = vpow2.f32 %v529_v10 }
 0x1c2   :  { %v719_v37 = vpop.eup %718 }
 0x1c3   :  { %v721_v32 = vpop.eup %720 }
 0x1c4   :  { %v723_v40 = vpop.eup %722  ;;  %v526_v18 = vadd.f32 %v721_v32, %v719_v37 }
 0x1c6   :  { %v531_v42 = vadd.f32 %v723_v40, %v526_v18 }
 0x1c8   :  { %724 = vlog2.f32 %v531_v42 }
 0x1d5   :  { %v725_v38 = vpop.eup %724 }
 0x1d6   :  { %v533_v41 = vmul.f32 0.6931472, %v725_v38 }
 0x1d8   :  { %v534_v44 = vmul.f32 0.1, %v533_v41 }
 0x1da   :  { %v535_v21 = vsub.f32 %v517_v19, %v534_v44 }
 0x1dc   :  { %v536_v47 = vadd.f32 %v535_v21, %v515_v45 }
 0x1de   :  { %v537_v31 = vmul.f32 0.083333336, %v536_v47 }
 0x1e0   :  { %538 = vst [vmem:[#allocation5] sm:$0xff] %v537_v31 }
 0x1e1   :  { %757 = shalt.err (!%p754_p9)
}
 0x1e2   :  { %548 = dma.vmem_to_hbm [thread:$0]  %s546_s13, 128, %s1011_s1, [#allocation4]  }
 0x1e3   :  { %768 = dma.done.wait [#allocation4], 128  }
 0x1e4   :  { %769 = vsyncadd [#allocation4], 4294967168 }
 0x1e5   :  { %552 = vsyncpa [#allocation3], 1 }
 0x1e6   :  { %553 = vsyncpa [#allocation4], 1 }

</bundles_post_ra>
